<compile_context>
chip_gen: v5e
topology: v5e:2x2
jax: 0.10.0
libtpu: 0.0.40
codegen_flags: <defaults>
</compile_context>

<pallas_src>
import jax
import jax.numpy as jnp
from jax import lax
from jax.experimental import pallas as pl
from jax.experimental.pallas import tpu as pltpu


# ----------------------------- fused Pallas kernel -----------------------------

def _make_fused_kernel(*, H, W, Cin, hidden, Cout, stride, TH,
                       has_expand, has_shortcut):
    Ho = (H - 1) // stride + 1
    Wo = (W - 1) // stride + 1
    TH_in = (TH - 1) * stride + 3           # DW input rows per tile (incl. 1-row halo)
    Hp, Wp = H + 2, W + 2

    def kernel(*refs):
        if has_expand and has_shortcut:
            (x_ref, w1_ref, b1_ref, wd_ref, bd_ref, w3t_ref, b3_ref,
             res_ref, o_ref, hpad_ref) = refs
        elif has_expand:
            (x_ref, w1_ref, b1_ref, wd_ref, bd_ref, w3t_ref, b3_ref,
             o_ref, hpad_ref) = refs
            res_ref = None
        elif has_shortcut:
            (x_ref, wd_ref, bd_ref, w3t_ref, b3_ref,
             res_ref, o_ref, hpad_ref) = refs
            w1_ref = b1_ref = None
        else:
            (x_ref, wd_ref, bd_ref, w3t_ref, b3_ref, o_ref, hpad_ref) = refs
            w1_ref = b1_ref = res_ref = None

        r = pl.program_id(1)

        # ---- expand 1x1 conv of the whole image, kept entirely in VMEM -------
        @pl.when(r == 0)
        def _expand_into_scratch():
            # zero scratch once per image: provides the 1-pixel zero halo that
            # replaces the old jnp.pad HBM round-trip.
            hpad_ref[...] = jnp.zeros((Hp, Wp, hidden), jnp.float32)
            xm = x_ref[0].reshape(H * W, Cin).astype(jnp.float32)
            if has_expand:
                h = jnp.dot(xm, w1_ref[...], preferred_element_type=jnp.float32)
                h = jnp.clip(h + b1_ref[...], 0.0, 6.0)
            else:
                h = xm
            hpad_ref[1:H + 1, 1:W + 1, :] = h.reshape(H, W, hidden)

        # ---- depthwise 3x3 conv on one row tile -------------------------------
        ws = pl.multiple_of(r * (TH * stride), TH * stride)
        hwin = hpad_ref[pl.ds(ws, TH_in), :, :]            # (TH_in, Wp, hidden)
        wdv = wd_ref[...]                                   # (9, hidden), loaded once

        acc = jnp.zeros((TH, Wo, hidden), jnp.float32)
        if stride == 1:
            for dy in range(3):
                for dx in range(3):
                    acc = acc + hwin[dy:dy + TH, dx:dx + Wo, :] * wdv[3 * dy + dx]
        else:  # stride == 2: split even/odd columns once (2 strided slices, not 9)
            h_even = hwin[:, 0::2, :]
            h_odd = hwin[:, 1::2, :]
            col_taps = (h_even[:, 0:Wo, :], h_odd[:, 0:Wo, :], h_even[:, 1:Wo + 1, :])
            for dy in range(3):
                for dx in range(3):
                    tap = col_taps[dx][dy:dy + stride * (TH - 1) + 1:stride, :, :]
                    acc = acc + tap * wdv[3 * dy + dx]

        y = jnp.clip(acc + bd_ref[...], 0.0, 6.0)           # (TH, Wo, hidden)

        # ---- project 1x1 conv: channel-major result => lane-dense NCHW store --
        y2 = y.reshape(TH * Wo, hidden)
        out_t = lax.dot_general(                            # (Cout, TH*Wo)
            w3t_ref[...], y2,
            dimension_numbers=(((1,), (1,)), ((), ())),
            preferred_element_type=jnp.float32)
        out_t = out_t + b3_ref[...]
        if has_shortcut:
            out_t = out_t + res_ref[0].astype(jnp.float32)
        o_ref[0] = out_t.astype(o_ref.dtype)

    return kernel


# --------------------------------- wrapper --------------------------------------

def _pick_row_tile(Ho, Wo, target=8):
    """Largest divisor of Ho <= target whose flat tile (d*Wo) is a multiple of 128
    (lane-dense output stores); otherwise fall back to the full height."""
    best = None
    for d in range(1, min(target, Ho) + 1):
        if Ho % d == 0 and (d * Wo) % 128 == 0:
            best = d
    return best if best is not None else Ho


def inverted_residual_forward(x_nchw, w1, b1, wd, bd, w3, b3, *,
                              stride, expand_ratio, use_shortcut, row_tile=8):
    """x_nchw: (N, Cin, H, W) -> (N, Cout, Ho, Wo).  BN already folded into weights."""
    assert stride in (1, 2)
    N, Cin, H, W = x_nchw.shape
    hidden = wd.shape[-1]
    Cout = w3.shape[1]
    Ho = (H - 1) // stride + 1
    Wo = (W - 1) // stride + 1
    TH = _pick_row_tile(Ho, Wo, row_tile)
    R = Ho // TH
    TH_in = (TH - 1) * stride + 3
    Hp, Wp = H + 2, W + 2
    has_expand = expand_ratio != 1

    # Only HBM pass outside the fused kernel: NCHW -> NHWC of the (small) input.
    x_nhwc = jnp.transpose(x_nchw, (0, 2, 3, 1))

    in_specs = [pl.BlockSpec((1, H, W, Cin), lambda n, r: (n, 0, 0, 0))]
    args = [x_nhwc]
    if has_expand:
        in_specs += [pl.BlockSpec((Cin, hidden), lambda n, r: (0, 0)),
                     pl.BlockSpec((1, hidden), lambda n, r: (0, 0))]
        args += [w1, b1.reshape(1, hidden)]
    in_specs += [pl.BlockSpec((9, hidden), lambda n, r: (0, 0)),
                 pl.BlockSpec((1, hidden), lambda n, r: (0, 0)),
                 pl.BlockSpec((Cout, hidden), lambda n, r: (0, 0)),
                 pl.BlockSpec((Cout, 1), lambda n, r: (0, 0))]
    args += [wd.reshape(9, hidden), bd.reshape(1, hidden),
             w3.T, b3.reshape(Cout, 1)]
    if use_shortcut:
        # residual read directly in lane-dense NCHW-flat layout (no transpose).
        in_specs += [pl.BlockSpec((1, Cout, TH * Wo), lambda n, r: (n, 0, r))]
        args += [x_nchw.reshape(N, Cin, H * W)]

    out_specs = pl.BlockSpec((1, Cout, TH * Wo), lambda n, r: (n, 0, r))
    out_shape = jax.ShapeDtypeStruct((N, Cout, Ho * Wo), x_nchw.dtype)

    # VMEM budget (f32 bytes): double-buffered blocks + resident hidden scratch
    # + in-kernel temporaries.  Cap at 64 MiB so tiling stays v7x-safe.
    est = 4 * (2 * H * W * Cin
               + 2 * Cout * TH * Wo
               + (2 * Cout * TH * Wo if use_shortcut else 0)
               + Hp * Wp * hidden
               + TH_in * Wp * hidden
               + 3 * TH * Wo * hidden
               + Cin * hidden + hidden * Cout + 12 * hidden + 2 * Cout)
    vmem_limit = int(min(max(2 * est, 32 * 1024 * 1024), 64 * 1024 * 1024))

    kernel = _make_fused_kernel(H=H, W=W, Cin=Cin, hidden=hidden, Cout=Cout,
                                stride=stride, TH=TH,
                                has_expand=has_expand, has_shortcut=use_shortcut)

    out = pl.pallas_call(
        kernel,
        out_shape=out_shape,
        grid=(N, R),
        in_specs=in_specs,
        out_specs=out_specs,
        scratch_shapes=[pltpu.VMEM((Hp, Wp, hidden), jnp.float32)],
        compiler_params=pltpu.CompilerParams(
            dimension_semantics=("parallel", "arbitrary"),
            vmem_limit_bytes=vmem_limit),
    )(*args)
    return out.reshape(N, Cout, Ho, Wo)


# ------------------------------- module port ------------------------------------

def _fold_bn(gamma, beta, mean, var, eps=1e-5):
    scale = gamma / jnp.sqrt(var + eps)
    bias = beta - mean * scale
    return scale, bias


class InvertedResidualPallas:
    def __init__(self, in_channel, out_channel, stride, expand_ratio, key):
        hidden = in_channel * expand_ratio
        self.in_channel = in_channel
        self.out_channel = out_channel
        self.stride = stride
        self.expand_ratio = expand_ratio
        self.hidden = hidden
        self.use_shortcut = (stride == 1 and in_channel == out_channel)

        ks = jax.random.split(key, 12)

        def bn_params(k0, k1, k2, k3, c):
            gamma = jax.random.uniform(k0, (c,), jnp.float32, 0.5, 1.5)
            beta = 0.1 * jax.random.normal(k1, (c,), jnp.float32)
            mean = 0.1 * jax.random.normal(k2, (c,), jnp.float32)
            var = jax.random.uniform(k3, (c,), jnp.float32, 0.5, 1.5)
            return gamma, beta, mean, var

        # expand 1x1 conv (only if expand_ratio != 1): PyTorch (hidden,in,1,1) -> (in,hidden)
        if expand_ratio != 1:
            w1 = 0.1 * jax.random.normal(ks[0], (in_channel, hidden), jnp.float32)
            s1, b1 = _fold_bn(*bn_params(ks[1], ks[2], ks[3], ks[4], hidden))
            self.w1 = w1 * s1[None, :]
            self.b1 = b1
        else:
            self.w1, self.b1 = None, None

        # depthwise 3x3 conv: PyTorch (hidden,1,3,3) -> (3,3,hidden)
        wd = 0.1 * jax.random.normal(ks[5], (3, 3, hidden), jnp.float32)
        sd, bd = _fold_bn(*bn_params(ks[6], ks[7], ks[8], ks[9], hidden))
        self.wd = wd * sd[None, None, :]
        self.bd = bd

        # project 1x1 conv: PyTorch (out,hidden,1,1) -> (hidden,out)
        w3 = 0.1 * jax.random.normal(ks[10], (hidden, out_channel), jnp.float32)
        s3, b3 = _fold_bn(*bn_params(*jax.random.split(ks[11], 4), out_channel))
        self.w3 = w3 * s3[None, :]
        self.b3 = b3

    def __call__(self, x_nchw):
        return inverted_residual_forward(
            x_nchw, self.w1, self.b1, self.wd, self.bd, self.w3, self.b3,
            stride=self.stride, expand_ratio=self.expand_ratio,
            use_shortcut=self.use_shortcut)


# -------------------------------- reference -------------------------------------

def _ref_forward(block, x_nchw):
    x = jnp.transpose(x_nchw, (0, 2, 3, 1))
    h = x
    if block.expand_ratio != 1:
        h = jnp.clip(jnp.einsum('nhwc,cd->nhwd', h, block.w1) + block.b1, 0.0, 6.0)
    C = block.hidden
    y = lax.conv_general_dilated(
        h, block.wd.reshape(3, 3, 1, C),
        window_strides=(block.stride, block.stride),
        padding=((1, 1), (1, 1)),
        dimension_numbers=('NHWC', 'HWIO', 'NHWC'),
        feature_group_count=C)
    y = jnp.clip(y + block.bd, 0.0, 6.0)
    out = jnp.einsum('nhwc,cd->nhwd', y, block.w3) + block.b3
    if block.use_shortcut:
        out = out + x
    return jnp.transpose(out, (0, 3, 1, 2))


# ----------------------------------- main ----------------------------------------

if __name__ == "__main__":
    key = jax.random.PRNGKey(0)
    configs = [
        # (in_channel, out_channel, stride, expand_ratio)
        (4, 4, 1, 2),    # expand + depthwise + project, with residual shortcut
        (4, 8, 2, 4),    # stride-2 depthwise, no shortcut
        (8, 8, 1, 1),    # expand_ratio == 1 (no expand stage), with shortcut
    ]
    for idx, (cin, cout, stride, er) in enumerate(configs):
        k_param, k_x, key = jax.random.split(key, 3)
        block = InvertedResidualPallas(cin, cout, stride, er, k_param)
        x = jax.random.normal(k_x, (2, cin, 16, 16), jnp.float32)  # NCHW

        out = jax.block_until_ready(block(x))
        ref = jax.block_until_ready(_ref_forward(block, x))

        Ho = (16 - 1) // stride + 1
        assert out.shape == (2, cout, Ho, Ho), out.shape
        assert jnp.allclose(out, ref, atol=1e-4, rtol=1e-4), \
            f"Pallas output mismatch vs reference in config {idx}"

    print("KERNEL_OK")
</pallas_src>

<mosaic_0001>
module attributes {stable_mosaic.version = 11 : i64} {
  func.func @kernel(%arg0: i32, %arg1: i32, %arg2: memref<1x16x16x4xf32, #tpu.memory_space<vmem>>, %arg3: memref<4x8xf32, #tpu.memory_space<vmem>>, %arg4: memref<1x8xf32, #tpu.memory_space<vmem>>, %arg5: memref<9x8xf32, #tpu.memory_space<vmem>>, %arg6: memref<1x8xf32, #tpu.memory_space<vmem>>, %arg7: memref<4x8xf32, #tpu.memory_space<vmem>>, %arg8: memref<4x1xf32, #tpu.memory_space<vmem>>, %arg9: memref<1x4x128xf32, #tpu.memory_space<vmem>>, %arg10: memref<1x4x128xf32, #tpu.memory_space<vmem>>, %arg11: memref<18x18x8xf32, #tpu.memory_space<vmem>>) attributes {dimension_semantics = [#tpu.dimension_semantics<parallel>, #tpu.dimension_semantics<arbitrary>], iteration_bounds = array<i64: 2, 2>, scalar_prefetch = 0 : i64, scratch_operands = 1 : i64, tpu.core_type = #tpu.core_type<tc>, window_params = [{transform_indices = @transform_0, window_bounds = array<i64: 1, 16, 16, 4>}, {pipeline_mode = #tpu.pipeline_mode<synchronous>, transform_indices = @transform_1, window_bounds = array<i64: 4, 8>}, {pipeline_mode = #tpu.pipeline_mode<synchronous>, transform_indices = @transform_2, window_bounds = array<i64: 1, 8>}, {pipeline_mode = #tpu.pipeline_mode<synchronous>, transform_indices = @transform_3, window_bounds = array<i64: 9, 8>}, {pipeline_mode = #tpu.pipeline_mode<synchronous>, transform_indices = @transform_4, window_bounds = array<i64: 1, 8>}, {pipeline_mode = #tpu.pipeline_mode<synchronous>, transform_indices = @transform_5, window_bounds = array<i64: 4, 8>}, {pipeline_mode = #tpu.pipeline_mode<synchronous>, transform_indices = @transform_6, window_bounds = array<i64: 4, 1>}, {transform_indices = @transform_7, window_bounds = array<i64: 1, 4, 128>}, {transform_indices = @transform_8, window_bounds = array<i64: 1, 4, 128>}]} {
    %c0_i32 = arith.constant 0 : i32
    %0 = arith.cmpi eq, %arg1, %c0_i32 : i32
    %1 = arith.extui %0 : i1 to i32
    %c0_i32_0 = arith.constant 0 : i32
    %2 = arith.cmpi ne, %1, %c0_i32_0 : i32
    scf.if %2 {
      %cst_19 = arith.constant 0.000000e+00 : f32
      %92 = vector.broadcast %cst_19 : f32 to vector<18x18x8xf32>
      %c0_20 = arith.constant 0 : index
      %c0_21 = arith.constant 0 : index
      %c0_22 = arith.constant 0 : index
      %93 = vector.load %arg11[%c0_20, %c0_21, %c0_22] : memref<18x18x8xf32, #tpu.memory_space<vmem>>, vector<18x18x8xf32>
      tpu.vector_store %arg11[%c0_20, %c0_21, %c0_22], %92 {strides = array<i32>} : memref<18x18x8xf32, #tpu.memory_space<vmem>>, vector<18x18x8xf32>,
      %c0_23 = arith.constant 0 : index
      %c0_24 = arith.constant 0 : index
      %c0_25 = arith.constant 0 : index
      %c0_26 = arith.constant 0 : index
      %94 = vector.load %arg2[%c0_23, %c0_24, %c0_25, %c0_26] : memref<1x16x16x4xf32, #tpu.memory_space<vmem>>, vector<1x16x16x4xf32>
      %95 = vector.shape_cast %94 : vector<1x16x16x4xf32> to vector<16x16x4xf32>
      %96 = vector.shape_cast %95 : vector<16x16x4xf32> to vector<256x4xf32>
      %c0_27 = arith.constant 0 : index
      %c0_28 = arith.constant 0 : index
      %97 = vector.load %arg3[%c0_27, %c0_28] : memref<4x8xf32, #tpu.memory_space<vmem>>, vector<4x8xf32>
      %cst_29 = arith.constant dense<0.000000e+00> : vector<256x8xf32>
      %98 = tpu.matmul %96, %97, %cst_29 {dimension_numbers = #tpu.dot_dimension_numbers<[1], [0], [0], [1], [0, 0, 1, 1], [], []>} : vector<256x4xf32>, vector<4x8xf32>, vector<256x8xf32> -> vector<256x8xf32>
      %c0_30 = arith.constant 0 : index
      %c0_31 = arith.constant 0 : index
      %99 = vector.load %arg4[%c0_30, %c0_31] : memref<1x8xf32, #tpu.memory_space<vmem>>, vector<1x8xf32>
      %100 = vector.broadcast %99 : vector<1x8xf32> to vector<256x8xf32>
      %101 = arith.addf %98, %100 : vector<256x8xf32>
      %cst_32 = arith.constant 0.000000e+00 : f32
      %cst_33 = arith.constant 6.000000e+00 : f32
      %102 = vector.broadcast %cst_32 : f32 to vector<256x8xf32>
      %103 = arith.maximumf %102, %101 : vector<256x8xf32>
      %104 = vector.broadcast %cst_33 : f32 to vector<256x8xf32>
      %105 = arith.minimumf %104, %103 : vector<256x8xf32>
      %106 = vector.shape_cast %105 : vector<256x8xf32> to vector<16x16x8xf32>
      %c1 = arith.constant 1 : index
      %c1_34 = arith.constant 1 : index
      %c0_35 = arith.constant 0 : index
      %107 = vector.load %arg11[%c1, %c1_34, %c0_35] : memref<18x18x8xf32, #tpu.memory_space<vmem>>, vector<16x16x8xf32>
      tpu.vector_store %arg11[%c1, %c1_34, %c0_35], %106 {strides = array<i32>} : memref<18x18x8xf32, #tpu.memory_space<vmem>>, vector<16x16x8xf32>,
    } else {
    }
    %c8_i32 = arith.constant 8 : i32
    %3 = arith.muli %arg1, %c8_i32 : i32
    %4 = tpu.assume_multiple %3, 8 : i32
    %5 = arith.index_cast %4 : i32 to index
    %c0 = arith.constant 0 : index
    %c0_1 = arith.constant 0 : index
    %6 = vector.load %arg11[%5, %c0, %c0_1] : memref<18x18x8xf32, #tpu.memory_space<vmem>>, vector<10x18x8xf32>
    %c0_2 = arith.constant 0 : index
    %c0_3 = arith.constant 0 : index
    %7 = vector.load %arg5[%c0_2, %c0_3] : memref<9x8xf32, #tpu.memory_space<vmem>>, vector<9x8xf32>
    %cst = arith.constant 0.000000e+00 : f32
    %8 = vector.broadcast %cst : f32 to vector<8x16x8xf32>
    %9 = vector.extract_strided_slice %6 {offsets = [0, 0, 0], sizes = [8, 16, 8], strides = [1, 1, 1]} : vector<10x18x8xf32> to vector<8x16x8xf32>
    %10 = vector.extract_strided_slice %7 {offsets = [0, 0], sizes = [1, 8], strides = [1, 1]} : vector<9x8xf32> to vector<1x8xf32>
    %11 = vector.shape_cast %10 : vector<1x8xf32> to vector<8xf32>
    %12 = vector.shape_cast %11 : vector<8xf32> to vector<1x1x8xf32>
    %13 = vector.broadcast %12 : vector<1x1x8xf32> to vector<8x16x8xf32>
    %14 = arith.mulf %9, %13 : vector<8x16x8xf32>
    %15 = arith.addf %8, %14 : vector<8x16x8xf32>
    %16 = vector.extract_strided_slice %6 {offsets = [0, 1, 0], sizes = [8, 16, 8], strides = [1, 1, 1]} : vector<10x18x8xf32> to vector<8x16x8xf32>
    %17 = vector.extract_strided_slice %7 {offsets = [1, 0], sizes = [1, 8], strides = [1, 1]} : vector<9x8xf32> to vector<1x8xf32>
    %18 = vector.shape_cast %17 : vector<1x8xf32> to vector<8xf32>
    %19 = vector.shape_cast %18 : vector<8xf32> to vector<1x1x8xf32>
    %20 = vector.broadcast %19 : vector<1x1x8xf32> to vector<8x16x8xf32>
    %21 = arith.mulf %16, %20 : vector<8x16x8xf32>
    %22 = arith.addf %15, %21 : vector<8x16x8xf32>
    %23 = vector.extract_strided_slice %6 {offsets = [0, 2, 0], sizes = [8, 16, 8], strides = [1, 1, 1]} : vector<10x18x8xf32> to vector<8x16x8xf32>
    %24 = vector.extract_strided_slice %7 {offsets = [2, 0], sizes = [1, 8], strides = [1, 1]} : vector<9x8xf32> to vector<1x8xf32>
    %25 = vector.shape_cast %24 : vector<1x8xf32> to vector<8xf32>
    %26 = vector.shape_cast %25 : vector<8xf32> to vector<1x1x8xf32>
    %27 = vector.broadcast %26 : vector<1x1x8xf32> to vector<8x16x8xf32>
    %28 = arith.mulf %23, %27 : vector<8x16x8xf32>
    %29 = arith.addf %22, %28 : vector<8x16x8xf32>
    %30 = vector.extract_strided_slice %6 {offsets = [1, 0, 0], sizes = [8, 16, 8], strides = [1, 1, 1]} : vector<10x18x8xf32> to vector<8x16x8xf32>
    %31 = vector.extract_strided_slice %7 {offsets = [3, 0], sizes = [1, 8], strides = [1, 1]} : vector<9x8xf32> to vector<1x8xf32>
    %32 = vector.shape_cast %31 : vector<1x8xf32> to vector<8xf32>
    %33 = vector.shape_cast %32 : vector<8xf32> to vector<1x1x8xf32>
    %34 = vector.broadcast %33 : vector<1x1x8xf32> to vector<8x16x8xf32>
    %35 = arith.mulf %30, %34 : vector<8x16x8xf32>
    %36 = arith.addf %29, %35 : vector<8x16x8xf32>
    %37 = vector.extract_strided_slice %6 {offsets = [1, 1, 0], sizes = [8, 16, 8], strides = [1, 1, 1]} : vector<10x18x8xf32> to vector<8x16x8xf32>
    %38 = vector.extract_strided_slice %7 {offsets = [4, 0], sizes = [1, 8], strides = [1, 1]} : vector<9x8xf32> to vector<1x8xf32>
    %39 = vector.shape_cast %38 : vector<1x8xf32> to vector<8xf32>
    %40 = vector.shape_cast %39 : vector<8xf32> to vector<1x1x8xf32>
    %41 = vector.broadcast %40 : vector<1x1x8xf32> to vector<8x16x8xf32>
    %42 = arith.mulf %37, %41 : vector<8x16x8xf32>
    %43 = arith.addf %36, %42 : vector<8x16x8xf32>
    %44 = vector.extract_strided_slice %6 {offsets = [1, 2, 0], sizes = [8, 16, 8], strides = [1, 1, 1]} : vector<10x18x8xf32> to vector<8x16x8xf32>
    %45 = vector.extract_strided_slice %7 {offsets = [5, 0], sizes = [1, 8], strides = [1, 1]} : vector<9x8xf32> to vector<1x8xf32>
    %46 = vector.shape_cast %45 : vector<1x8xf32> to vector<8xf32>
    %47 = vector.shape_cast %46 : vector<8xf32> to vector<1x1x8xf32>
    %48 = vector.broadcast %47 : vector<1x1x8xf32> to vector<8x16x8xf32>
    %49 = arith.mulf %44, %48 : vector<8x16x8xf32>
    %50 = arith.addf %43, %49 : vector<8x16x8xf32>
    %51 = vector.extract_strided_slice %6 {offsets = [2, 0, 0], sizes = [8, 16, 8], strides = [1, 1, 1]} : vector<10x18x8xf32> to vector<8x16x8xf32>
    %52 = vector.extract_strided_slice %7 {offsets = [6, 0], sizes = [1, 8], strides = [1, 1]} : vector<9x8xf32> to vector<1x8xf32>
    %53 = vector.shape_cast %52 : vector<1x8xf32> to vector<8xf32>
    %54 = vector.shape_cast %53 : vector<8xf32> to vector<1x1x8xf32>
    %55 = vector.broadcast %54 : vector<1x1x8xf32> to vector<8x16x8xf32>
    %56 = arith.mulf %51, %55 : vector<8x16x8xf32>
    %57 = arith.addf %50, %56 : vector<8x16x8xf32>
    %58 = vector.extract_strided_slice %6 {offsets = [2, 1, 0], sizes = [8, 16, 8], strides = [1, 1, 1]} : vector<10x18x8xf32> to vector<8x16x8xf32>
    %59 = vector.extract_strided_slice %7 {offsets = [7, 0], sizes = [1, 8], strides = [1, 1]} : vector<9x8xf32> to vector<1x8xf32>
    %60 = vector.shape_cast %59 : vector<1x8xf32> to vector<8xf32>
    %61 = vector.shape_cast %60 : vector<8xf32> to vector<1x1x8xf32>
    %62 = vector.broadcast %61 : vector<1x1x8xf32> to vector<8x16x8xf32>
    %63 = arith.mulf %58, %62 : vector<8x16x8xf32>
    %64 = arith.addf %57, %63 : vector<8x16x8xf32>
    %65 = vector.extract_strided_slice %6 {offsets = [2, 2, 0], sizes = [8, 16, 8], strides = [1, 1, 1]} : vector<10x18x8xf32> to vector<8x16x8xf32>
    %66 = vector.extract_strided_slice %7 {offsets = [8, 0], sizes = [1, 8], strides = [1, 1]} : vector<9x8xf32> to vector<1x8xf32>
    %67 = vector.shape_cast %66 : vector<1x8xf32> to vector<8xf32>
    %68 = vector.shape_cast %67 : vector<8xf32> to vector<1x1x8xf32>
    %69 = vector.broadcast %68 : vector<1x1x8xf32> to vector<8x16x8xf32>
    %70 = arith.mulf %65, %69 : vector<8x16x8xf32>
    %71 = arith.addf %64, %70 : vector<8x16x8xf32>
    %c0_4 = arith.constant 0 : index
    %c0_5 = arith.constant 0 : index
    %72 = vector.load %arg6[%c0_4, %c0_5] : memref<1x8xf32, #tpu.memory_space<vmem>>, vector<1x8xf32>
    %73 = vector.shape_cast %72 : vector<1x8xf32> to vector<1x1x8xf32>
    %74 = vector.broadcast %73 : vector<1x1x8xf32> to vector<8x16x8xf32>
    %75 = arith.addf %71, %74 : vector<8x16x8xf32>
    %cst_6 = arith.constant 0.000000e+00 : f32
    %cst_7 = arith.constant 6.000000e+00 : f32
    %76 = vector.broadcast %cst_6 : f32 to vector<8x16x8xf32>
    %77 = arith.maximumf %76, %75 : vector<8x16x8xf32>
    %78 = vector.broadcast %cst_7 : f32 to vector<8x16x8xf32>
    %79 = arith.minimumf %78, %77 : vector<8x16x8xf32>
    %80 = vector.shape_cast %79 : vector<8x16x8xf32> to vector<128x8xf32>
    %c0_8 = arith.constant 0 : index
    %c0_9 = arith.constant 0 : index
    %81 = vector.load %arg7[%c0_8, %c0_9] : memref<4x8xf32, #tpu.memory_space<vmem>>, vector<4x8xf32>
    %cst_10 = arith.constant dense<0.000000e+00> : vector<4x128xf32>
    %82 = tpu.matmul %81, %80, %cst_10 {dimension_numbers = #tpu.dot_dimension_numbers<[1], [1], [0], [0], [0, 0, 1, 0], [], []>} : vector<4x8xf32>, vector<128x8xf32>, vector<4x128xf32> -> vector<4x128xf32>
    %c0_11 = arith.constant 0 : index
    %c0_12 = arith.constant 0 : index
    %83 = vector.load %arg8[%c0_11, %c0_12] : memref<4x1xf32, #tpu.memory_space<vmem>>, vector<4x1xf32>
    %84 = vector.broadcast %83 : vector<4x1xf32> to vector<4x128xf32>
    %85 = arith.addf %82, %84 : vector<4x128xf32>
    %c0_13 = arith.constant 0 : index
    %c0_14 = arith.constant 0 : index
    %c0_15 = arith.constant 0 : index
    %86 = vector.load %arg9[%c0_13, %c0_14, %c0_15] : memref<1x4x128xf32, #tpu.memory_space<vmem>>, vector<1x4x128xf32>
    %87 = vector.shape_cast %86 : vector<1x4x128xf32> to vector<4x128xf32>
    %88 = arith.addf %85, %87 : vector<4x128xf32>
    %c0_16 = arith.constant 0 : index
    %c0_17 = arith.constant 0 : index
    %c0_18 = arith.constant 0 : index
    %89 = vector.load %arg10[%c0_16, %c0_17, %c0_18] : memref<1x4x128xf32, #tpu.memory_space<vmem>>, vector<1x4x128xf32>
    %90 = vector.shape_cast %89 : vector<1x4x128xf32> to vector<4x128xf32>
    %91 = vector.shape_cast %88 : vector<4x128xf32> to vector<1x4x128xf32>
    tpu.vector_store %arg10[%c0_16, %c0_17, %c0_18], %91 {strides = array<i32>} : memref<1x4x128xf32, #tpu.memory_space<vmem>>, vector<1x4x128xf32>,
    return
  }
  func.func @transform_0(%arg0: i32, %arg1: i32) -> (i32, i32, i32, i32) {
    %c0_i32 = arith.constant 0 : i32
    %c0_i32_0 = arith.constant 0 : i32
    %c0_i32_1 = arith.constant 0 : i32
    %c0_i32_2 = arith.constant 0 : i32
    return %arg0, %c0_i32, %c0_i32_0, %c0_i32_1 : i32, i32, i32, i32
  }
  func.func @transform_1(%arg0: i32, %arg1: i32) -> (i32, i32) {
    %c0_i32 = arith.constant 0 : i32
    %c0_i32_0 = arith.constant 0 : i32
    %c0_i32_1 = arith.constant 0 : i32
    return %c0_i32, %c0_i32_0 : i32, i32
  }
  func.func @transform_2(%arg0: i32, %arg1: i32) -> (i32, i32) {
    %c0_i32 = arith.constant 0 : i32
    %c0_i32_0 = arith.constant 0 : i32
    %c0_i32_1 = arith.constant 0 : i32
    return %c0_i32, %c0_i32_0 : i32, i32
  }
  func.func @transform_3(%arg0: i32, %arg1: i32) -> (i32, i32) {
    %c0_i32 = arith.constant 0 : i32
    %c0_i32_0 = arith.constant 0 : i32
    %c0_i32_1 = arith.constant 0 : i32
    return %c0_i32, %c0_i32_0 : i32, i32
  }
  func.func @transform_4(%arg0: i32, %arg1: i32) -> (i32, i32) {
    %c0_i32 = arith.constant 0 : i32
    %c0_i32_0 = arith.constant 0 : i32
    %c0_i32_1 = arith.constant 0 : i32
    return %c0_i32, %c0_i32_0 : i32, i32
  }
  func.func @transform_5(%arg0: i32, %arg1: i32) -> (i32, i32) {
    %c0_i32 = arith.constant 0 : i32
    %c0_i32_0 = arith.constant 0 : i32
    %c0_i32_1 = arith.constant 0 : i32
    return %c0_i32, %c0_i32_0 : i32, i32
  }
  func.func @transform_6(%arg0: i32, %arg1: i32) -> (i32, i32) {
    %c0_i32 = arith.constant 0 : i32
    %c0_i32_0 = arith.constant 0 : i32
    %c0_i32_1 = arith.constant 0 : i32
    return %c0_i32, %c0_i32_0 : i32, i32
  }
  func.func @transform_7(%arg0: i32, %arg1: i32) -> (i32, i32, i32) {
    %c0_i32 = arith.constant 0 : i32
    %c0_i32_0 = arith.constant 0 : i32
    return %arg0, %c0_i32, %arg1 : i32, i32, i32
  }
  func.func @transform_8(%arg0: i32, %arg1: i32) -> (i32, i32, i32) {
    %c0_i32 = arith.constant 0 : i32
    %c0_i32_0 = arith.constant 0 : i32
    return %arg0, %c0_i32, %arg1 : i32, i32, i32
  }
}

</mosaic_0001>

<bundles_post_ra>
// kernel: tpu_custom_call.1
= control target key start
LH: loop header
LB: loop body
LE: loop exit
PB: predicated region body
PF: predicated region fallthrough
CT: control target
= control target key end

     0   :  { %13 = vsyncpa [#allocation4], 0  ;;  %s3252_s0 = inlined_call_operand.vmem [shape: f32[2,16,16,4], index: 0, kind: input, shape index: {}]   ;;  %s3253_s1 = inlined_call_operand.vmem [shape: f32[4,8], index: 1, kind: input, shape index: {}]   ;;  %s3254_s2 = inlined_call_operand.vmem [shape: f32[1,8], index: 2, kind: input, shape index: {}]   ;;  %s3255_s3 = inlined_call_operand.vmem [shape: f32[9,8], index: 3, kind: input, shape index: {}]   ;;  %s3256_s4 = inlined_call_operand.vmem [shape: f32[1,8], index: 4, kind: input, shape index: {}]   ;;  %s3257_s5 = inlined_call_operand.vmem [shape: f32[4,8], index: 5, kind: input, shape index: {}]   ;;  %s3258_s6 = inlined_call_operand.vmem [shape: f32[4,1], index: 6, kind: input, shape index: {}]   ;;  %s3259_s7 = inlined_call_operand.vmem [shape: f32[2,4,256], index: 7, kind: input, shape index: {}]   ;;  %s3260_s8 = inlined_call_operand.hbm [shape: f32[2,4,256], index: 8, kind: output, shape index: {}]  }
   0x1   :  { %15 = vsyncpa [#allocation4 + $0x1], 0  ;;  %s2157_s27 = smov 0   ;;  %s2159_s28 = smov 0  }
   0x2   :  { %s2161_s29 = smov 0   ;;  %s2163_s30 = smov 0  }
   0x3   :  { %s2165_s9 = smov 0   ;;  %s2167_s10 = smov 0  }
   0x4   :  { %s2169_s11 = smov 0   ;;  %s2171_s12 = smov 0  }
   0x5 LB: > { %3268 = sst [smem:[#allocation6_spill]] %s2088_s29  ;;  %s1863_s13 = sadd.s32 4294967295, %s2108_s12   ;;  %s2108_s12 = sphi %s2171_s12, %s21_s12   ;;  %s2104_s11 = sphi %s2169_s11, %s3284_s11   ;;  %s2100_s10 = sphi %s2167_s10, %s3283_s10   ;;  %s2096_s9 = sphi %s2165_s9, %s3282_s9   ;;  %s2092_s30 = sphi %s2163_s30, %s3281_s30   ;;  %s2088_s29 = sphi %s2161_s29, %s3280_s29   ;;  %s2084_s28 = sphi %s2159_s28, %s3286_s28   ;;  %s2080_s27 = sphi %s2157_s27, %s3285_s27  }
   0x6   : > { %3269 = sst [smem:[#allocation7_spill]] %s2100_s10  ;;  %s1864_s14 = sadd.s32 4294967294, %s2108_s12  }
   0x7   : > { %3270 = sst [smem:[#allocation8_spill]] %s2104_s11  ;;  %s30_s15 = sadd.s32 1, %s2100_s10 }
   0x8   : > { %p31_p0 = scmp.ge.s32.totalorder %s30_s15, 2  ;;  %s33_s16 = sadd.s32 1, %s2104_s11 }
   0x9   : > { %p232_p1 = scmp.ne.s32.totalorder %s2088_s29, %s2084_s28  ;;  %p233_p2 = scmp.eq.s32.totalorder %s1863_s13, 3 }
   0xa   : > { %s3288_s15 = smov (%p31_p0, %s30_s15), 0  ;;  %s3290_s16 = smov (!%p31_p0, %s33_s16), %s2104_s11 }
   0xb   : > { %3271 = sst [smem:[#allocation9_spill]] %s3288_s15  ;;  %s218_s17 = ssub.s32 %s2100_s10, %s3288_s15 }
   0xc   : > { %p2208_p3 = por %p233_p2, %p232_p1  ;;  %p35_p4 = scmp.ge.s32.totalorder %s3290_s16, 2 }
   0xd   : > { %p238_p5 = scmp.ne.s32.totalorder %s2084_s28, %s2080_s27  ;;  %p239_p6 = scmp.eq.s32.totalorder %s1864_s14, 3 }
   0xe   : > { %p1867_p7 = scmp.ge.s32.totalorder %s2108_s12, 1  ;;  %s3292_s16 = smov (%p35_p4, %s3290_s16), 0 }
   0xf   : > { %3273 = sst [smem:[#allocation10_spill]] %s3292_s16  ;;  %p2217_p8 = por %p239_p6, %p238_p5 }
  0x10   : > { %p294_p9 = scmp.lt.s32.totalorder %s2108_s12, 5  ;;  %s217_s20 = ssub.s32 %s2104_s11, %s3292_s16 }
  0x11   : > { %s3274_s19 = scalar_select %p2217_p8, 1, 0 }
  0x12   : > { %s222_s21 = sadd.s32 1, %s2088_s29  ;;  %s219_s22 = sor.u32 %s218_s17, %s217_s20 }
  0x13   : > { %3275 = sst [smem:[#allocation11_spill]] %s3274_s19  ;;  %p295_p10 = pnand %p1867_p7, %p294_p9 }
  0x14   : > { %p220_p11 = scmp.eq.s32.totalorder %s219_s22, 0  ;;  %s3265_s24 = sand.u32 (!%p295_p10), 1, %s2084_s28  }
  0x15   : > { %298 = sbr.rel (%p295_p10) target bundleno = 543 (0x21f), region = 52  ;;  %p336_p12 = scmp.lt.s32.totalorder (!%p295_p10), %s2096_s9, 1 }
  0x16   : > { %s2226_s23 = scalar_select %p220_p11, %s2088_s29, %s222_s21  }
  0x17   : > { %s2232_s25 = sshll.u32 (!%p295_p10), %s3265_s24, 2  ;;  %p343_p13 = scmp.lt.s32.totalorder (!%p295_p10), %s2092_s30, 1 }
  0x18   : > { %3276 = sst [smem:[#allocation12_spill]] %s2226_s23  ;;  %s335_s24 = scalar_lea.vmem (!%p295_p10), [#allocation3], %s2232_s25 }
  0x19   : > { %p1873_p0 = scmp.ne.s32.totalorder (!%p295_p10), %s2092_s30, 0 }
  0x1a   : > { %s337_s26 = scalar_select %p336_p12, %s2096_s9, 1 }
  0x1b   : > { %s344_s13 = scalar_select %p343_p13, %s2092_s30, 1 }
  0x1c   : > { %s1931_s14 = sshll.u32 %s337_s26, 8  ;;  %s1871_s17 = sshll.u32 %s337_s26, 1 }
  0x1d   : > { %s2240_s22 = scalar_lea.vmem %s3252_s0, %s1931_s14  ;;  %s346_s16 = sadd.s32 %s1871_s17, %s344_s13 }
  0x1e   : > { %s1872_s15 = sshll.u32 %s346_s16, 2  ;;  %352 = sbr.rel (%p1873_p0) target bundleno = 233 (0xe9), region = 56 }
  0x1f   : > { %s2245_s23 = scalar_lea.vmem %s3259_s7, %s1872_s15 }
  0x23   : > { %v441_v0 = vld [vmem:[%s3253_s1] sm:$0xf]  ;;  %vm543_vm0 = vcmask 1043456   ;;  %vm446_vm1 = vcmask 31744   ;;  %v426_v5 = vld [vmem:[%s2240_s22 + $0x88] sm:$0xff]  ;;  %v427_v9 = vld [vmem:[%s2240_s22 + $0x90] sm:$0xff] }
  0x24   : > { %v425_v1 = vld [vmem:[%s2240_s22 + $0x80] sm:$0xff]  ;;  %1933 = vmatpush.msk.msra.mxu2 %vm543_vm0, %v441_v0  ;;  %1934 = vmatpush.msk.msra.mxu3 %vm543_vm0, %v441_v0  ;;  %v434_v6 = vld [vmem:[%s2240_s22 + $0xc8] sm:$0xff]  ;;  %v435_v10 = vld [vmem:[%s2240_s22 + $0xd0] sm:$0xff]  ;;  %vm353_vm2 = vcmask 64512   ;;  %v2110_v17 = vmov 0.0   ;;  %vm356_vm3 = vcmask 58368  }
  0x25   : > { %v433_v2 = vld [vmem:[%s2240_s22 + $0xc0] sm:$0xff]  ;;  %1891 = vmatmul.msk.f32.vlgmr.msra.gmra.mxu2 %vm446_vm1, %v425_v1  ;;  %1874 = vmatpush.msk.msra.mxu0 %vm543_vm0, %v441_v0  ;;  %v410_v7 = vld [vmem:[%s2240_s22 + $0x8] sm:$0xff]  ;;  %v411_v11 = vld [vmem:[%s2240_s22 + $0x10] sm:$0xff]  ;;  %354 = vst.msk [vmem:[#allocation2] sm:$0xff] %vm353_vm2, %v2110_v17 }
  0x26   : > { %v409_v3 = vld [vmem:[%s2240_s22] sm:$0xff]  ;;  %1899 = vmatmul.msk.f32.vlgmr.msra.gmra.mxu3 %vm446_vm1, %v433_v2  ;;  %1932 = vmatpush.msk.msra.mxu1 %vm543_vm0, %v441_v0  ;;  %v418_v8 = vld [vmem:[%s2240_s22 + $0x48] sm:$0xff]  ;;  %v419_v12 = vld [vmem:[%s2240_s22 + $0x50] sm:$0xff]  ;;  %355 = vst.msk [vmem:[#allocation2 + $0x8] sm:$0xff] %vm353_vm2, %v2110_v17 }
  0x27   : > { %v417_v4 = vld [vmem:[%s2240_s22 + $0x40] sm:$0xff]  ;;  %1875 = vmatmul.msk.f32.vlgmr.msra.gmra.mxu0 %vm446_vm1, %v409_v3  ;;  %v428_v13 = vld [vmem:[%s2240_s22 + $0x98] sm:$0xff]  ;;  %358 = vst.msk [vmem:[#allocation2 + $0x18] sm:$0xff] %vm353_vm2, %v2110_v17  ;;  %v430_v22 = vld [vmem:[%s2240_s22 + $0xa8] sm:$0xff] }
  0x28   : > { %1883 = vmatmul.msk.f32.vlgmr.msra.gmra.mxu1 %vm446_vm1, %v417_v4  ;;  %v436_v14 = vld [vmem:[%s2240_s22 + $0xd8] sm:$0xff]  ;;  %v429_v18 = vld [vmem:[%s2240_s22 + $0xa0] sm:$0xff]  ;;  %359 = vst.msk [vmem:[#allocation2 + $0x20] sm:$0xff] %vm353_vm2, %v2110_v17  ;;  %v438_v23 = vld [vmem:[%s2240_s22 + $0xe8] sm:$0xff] }
  0x29   : > { %v412_v15 = vld [vmem:[%s2240_s22 + $0x18] sm:$0xff]  ;;  %v437_v19 = vld [vmem:[%s2240_s22 + $0xe0] sm:$0xff]  ;;  %406 = vst.msk [vmem:[#allocation2 + $0x198] sm:$0xff] %vm353_vm2, %v2110_v17  ;;  %v414_v24 = vld [vmem:[%s2240_s22 + $0x28] sm:$0xff] }
  0x2a   : > { %v420_v16 = vld [vmem:[%s2240_s22 + $0x58] sm:$0xff]  ;;  %v413_v20 = vld [vmem:[%s2240_s22 + $0x20] sm:$0xff]  ;;  %407 = vst.msk [vmem:[#allocation2 + $0x1a0] sm:$0xff] %vm353_vm2, %v2110_v17  ;;  %v422_v25 = vld [vmem:[%s2240_s22 + $0x68] sm:$0xff] }
  0x2b   : > { %v421_v21 = vld [vmem:[%s2240_s22 + $0x60] sm:$0xff]  ;;  %361 = vst.msk [vmem:[#allocation2 + $0x30] sm:$0xff] %vm353_vm2, %v2110_v17  ;;  %v431_v26 = vld [vmem:[%s2240_s22 + $0xb0] sm:$0xff]  ;;  %v432_v30 = vld [vmem:[%s2240_s22 + $0xb8] sm:$0xff] }
  0x2c   : > { %362 = vst.msk [vmem:[#allocation2 + $0x38] sm:$0xff] %vm353_vm2, %v2110_v17  ;;  %v439_v27 = vld [vmem:[%s2240_s22 + $0xf0] sm:$0xff]  ;;  %v440_v31 = vld [vmem:[%s2240_s22 + $0xf8] sm:$0xff]  ;;  %v2423_v34 = vld [vmem:[%s3254_s2] ss:$0 sm:$0xff] }
  0x2d   : > { %1892 = vmatmul.msk.f32.gmra.mxu2 %vm446_vm1, %v426_v5  ;;  %364 = vst.msk [vmem:[#allocation2 + $0x48] sm:$0xff] %vm353_vm2, %v2110_v17  ;;  %v415_v28 = vld [vmem:[%s2240_s22 + $0x30] sm:$0xff]  ;;  %v416_v32 = vld [vmem:[%s2240_s22 + $0x38] sm:$0xff] }
  0x2e   : > { %1900 = vmatmul.msk.f32.gmra.mxu3 %vm446_vm1, %v434_v6  ;;  %365 = vst.msk [vmem:[#allocation2 + $0x50] sm:$0xff] %vm353_vm2, %v2110_v17  ;;  %v423_v29 = vld [vmem:[%s2240_s22 + $0x70] sm:$0xff]  ;;  %v424_v33 = vld [vmem:[%s2240_s22 + $0x78] sm:$0xff] }
  0x2f   : > { %1876 = vmatmul.msk.f32.gmra.mxu0 %vm446_vm1, %v410_v7  ;;  %367 = vst.msk [vmem:[#allocation2 + $0x60] sm:$0xff] %vm353_vm2, %v2110_v17 }
  0x30   : > { %1884 = vmatmul.msk.f32.gmra.mxu1 %vm446_vm1, %v418_v8  ;;  %368 = vst.msk [vmem:[#allocation2 + $0x68] sm:$0xff] %vm353_vm2, %v2110_v17 }
  0x31   : > { %370 = vst.msk [vmem:[#allocation2 + $0x78] sm:$0xff] %vm353_vm2, %v2110_v17 }
  0x32   : > { %371 = vst.msk [vmem:[#allocation2 + $0x80] sm:$0xff] %vm353_vm2, %v2110_v17 }
  0x33   : > { %373 = vst.msk [vmem:[#allocation2 + $0x90] sm:$0xff] %vm353_vm2, %v2110_v17 }
  0x34   : > { %374 = vst.msk [vmem:[#allocation2 + $0x98] sm:$0xff] %vm353_vm2, %v2110_v17 }
  0x35   : > { %1893 = vmatmul.msk.f32.gmra.mxu2 %vm446_vm1, %v427_v9  ;;  %376 = vst.msk [vmem:[#allocation2 + $0xa8] sm:$0xff] %vm353_vm2, %v2110_v17 }
  0x36   : > { %1901 = vmatmul.msk.f32.gmra.mxu3 %vm446_vm1, %v435_v10  ;;  %377 = vst.msk [vmem:[#allocation2 + $0xb0] sm:$0xff] %vm353_vm2, %v2110_v17 }
  0x37   : > { %1877 = vmatmul.msk.f32.gmra.mxu0 %vm446_vm1, %v411_v11  ;;  %379 = vst.msk [vmem:[#allocation2 + $0xc0] sm:$0xff] %vm353_vm2, %v2110_v17 }
  0x38   : > { %1885 = vmatmul.msk.f32.gmra.mxu1 %vm446_vm1, %v419_v12  ;;  %380 = vst.msk [vmem:[#allocation2 + $0xc8] sm:$0xff] %vm353_vm2, %v2110_v17 }
  0x39   : > { %382 = vst.msk [vmem:[#allocation2 + $0xd8] sm:$0xff] %vm353_vm2, %v2110_v17 }
  0x3a   : > { %383 = vst.msk [vmem:[#allocation2 + $0xe0] sm:$0xff] %vm353_vm2, %v2110_v17 }
  0x3b   : > { %385 = vst.msk [vmem:[#allocation2 + $0xf0] sm:$0xff] %vm353_vm2, %v2110_v17 }
  0x3c   : > { %386 = vst.msk [vmem:[#allocation2 + $0xf8] sm:$0xff] %vm353_vm2, %v2110_v17 }
  0x3d   : > { %1894 = vmatmul.msk.f32.gmra.mxu2 %vm446_vm1, %v428_v13  ;;  %388 = vst.msk [vmem:[#allocation2 + $0x108] sm:$0xff] %vm353_vm2, %v2110_v17 }
  0x3e   : > { %1902 = vmatmul.msk.f32.gmra.mxu3 %vm446_vm1, %v436_v14  ;;  %389 = vst.msk [vmem:[#allocation2 + $0x110] sm:$0xff] %vm353_vm2, %v2110_v17 }
  0x3f   : > { %1878 = vmatmul.msk.f32.gmra.mxu0 %vm446_vm1, %v412_v15  ;;  %391 = vst.msk [vmem:[#allocation2 + $0x120] sm:$0xff] %vm353_vm2, %v2110_v17 }
  0x40   : > { %1886 = vmatmul.msk.f32.gmra.mxu1 %vm446_vm1, %v420_v16  ;;  %392 = vst.msk [vmem:[#allocation2 + $0x128] sm:$0xff] %vm353_vm2, %v2110_v17 }
  0x41   : > { %394 = vst.msk [vmem:[#allocation2 + $0x138] sm:$0xff] %vm353_vm2, %v2110_v17 }
  0x42   : > { %395 = vst.msk [vmem:[#allocation2 + $0x140] sm:$0xff] %vm353_vm2, %v2110_v17 }
  0x43   : > { %397 = vst.msk [vmem:[#allocation2 + $0x150] sm:$0xff] %vm353_vm2, %v2110_v17 }
  0x44   : > { %398 = vst.msk [vmem:[#allocation2 + $0x158] sm:$0xff] %vm353_vm2, %v2110_v17 }
  0x45   : > { %1895 = vmatmul.msk.f32.gmra.mxu2 %vm446_vm1, %v429_v18  ;;  %400 = vst.msk [vmem:[#allocation2 + $0x168] sm:$0xff] %vm353_vm2, %v2110_v17 }
  0x46   : > { %1903 = vmatmul.msk.f32.gmra.mxu3 %vm446_vm1, %v437_v19  ;;  %401 = vst.msk [vmem:[#allocation2 + $0x170] sm:$0xff] %vm353_vm2, %v2110_v17 }
  0x47   : > { %1879 = vmatmul.msk.f32.gmra.mxu0 %vm446_vm1, %v413_v20  ;;  %403 = vst.msk [vmem:[#allocation2 + $0x180] sm:$0xff] %vm353_vm2, %v2110_v17 }
  0x48   : > { %1887 = vmatmul.msk.f32.gmra.mxu1 %vm446_vm1, %v421_v21  ;;  %404 = vst.msk [vmem:[#allocation2 + $0x188] sm:$0xff] %vm353_vm2, %v2110_v17 }
  0x49   : > { %357 = vst.msk [vmem:[#allocation2 + $0x10] sm:$0x3] %vm356_vm3, %v2110_v17 }
  0x4a   : > { %360 = vst.msk [vmem:[#allocation2 + $0x28] sm:$0x3] %vm356_vm3, %v2110_v17 }
  0x4b   : > { %408 = vst.msk [vmem:[#allocation2 + $0x1a8] sm:$0x3] %vm356_vm3, %v2110_v17 }
  0x4c   : > { %363 = vst.msk [vmem:[#allocation2 + $0x40] sm:$0x3] %vm356_vm3, %v2110_v17 }
  0x4d   : > { %1896 = vmatmul.msk.f32.gmra.mxu2 %vm446_vm1, %v430_v22  ;;  %366 = vst.msk [vmem:[#allocation2 + $0x58] sm:$0x3] %vm356_vm3, %v2110_v17 }
  0x4e   : > { %1904 = vmatmul.msk.f32.gmra.mxu3 %vm446_vm1, %v438_v23  ;;  %369 = vst.msk [vmem:[#allocation2 + $0x70] sm:$0x3] %vm356_vm3, %v2110_v17 }
  0x4f   : > { %1880 = vmatmul.msk.f32.gmra.mxu0 %vm446_vm1, %v414_v24  ;;  %372 = vst.msk [vmem:[#allocation2 + $0x88] sm:$0x3] %vm356_vm3, %v2110_v17 }
  0x50   : > { %1888 = vmatmul.msk.f32.gmra.mxu1 %vm446_vm1, %v422_v25  ;;  %375 = vst.msk [vmem:[#allocation2 + $0xa0] sm:$0x3] %vm356_vm3, %v2110_v17 }
  0x51   : > { %378 = vst.msk [vmem:[#allocation2 + $0xb8] sm:$0x3] %vm356_vm3, %v2110_v17 }
  0x52   : > { %381 = vst.msk [vmem:[#allocation2 + $0xd0] sm:$0x3] %vm356_vm3, %v2110_v17 }
  0x53   : > { %384 = vst.msk [vmem:[#allocation2 + $0xe8] sm:$0x3] %vm356_vm3, %v2110_v17 }
  0x54   : > { %387 = vst.msk [vmem:[#allocation2 + $0x100] sm:$0x3] %vm356_vm3, %v2110_v17 }
  0x55   : > { %1897 = vmatmul.msk.f32.gmra.mxu2 %vm446_vm1, %v431_v26  ;;  %390 = vst.msk [vmem:[#allocation2 + $0x118] sm:$0x3] %vm356_vm3, %v2110_v17 }
  0x56   : > { %1905 = vmatmul.msk.f32.gmra.mxu3 %vm446_vm1, %v439_v27  ;;  %393 = vst.msk [vmem:[#allocation2 + $0x130] sm:$0x3] %vm356_vm3, %v2110_v17 }
  0x57   : > { %1881 = vmatmul.msk.f32.gmra.mxu0 %vm446_vm1, %v415_v28  ;;  %396 = vst.msk [vmem:[#allocation2 + $0x148] sm:$0x3] %vm356_vm3, %v2110_v17 }
  0x58   : > { %1889 = vmatmul.msk.f32.gmra.mxu1 %vm446_vm1, %v423_v29  ;;  %399 = vst.msk [vmem:[#allocation2 + $0x160] sm:$0x3] %vm356_vm3, %v2110_v17 }
  0x59   : > { %402 = vst.msk [vmem:[#allocation2 + $0x178] sm:$0x3] %vm356_vm3, %v2110_v17 }
  0x5a   : > { %405 = vst.msk [vmem:[#allocation2 + $0x190] sm:$0x3] %vm356_vm3, %v2110_v17 }
  0x5d   : > { %1898 = vmatmul.msk.f32.gmra.mxu2 %vm446_vm1, %v432_v30 }
  0x5e   : > { %1906 = vmatmul.msk.f32.gmra.mxu3 %vm446_vm1, %v440_v31 }
  0x5f   : > { %1882 = vmatmul.msk.f32.gmra.mxu0 %vm446_vm1, %v416_v32 }
  0x60   : > { %1890 = vmatmul.msk.f32.gmra.mxu1 %vm446_vm1, %v424_v33 }
  0xa4   : > { %v564_v35 = vpop.f32.mrf.mxu0 }
  0xa5   : > { %v588_v36 = vpop.f32.mrf.mxu1  ;;  %v565_v37 = vadd.f32 %v2423_v34, %v564_v35 }
  0xa6   : > { %v589_v38 = vadd.f32 %v2423_v34, %v588_v36 }
  0xa7   : > { %v660_v39 = vmax.f32 %v565_v37, 0.0 }
  0xa8   : > { %v668_v40 = vmax.f32 %v589_v38, 0.0  ;;  %v612_v41 = vpop.f32.mrf.mxu2 }
  0xa9   : > { %v636_v42 = vpop.f32.mrf.mxu3  ;;  %v692_v43 = vmin.f32 %v660_v39, 6.0  ;;  %v613_v45 = vadd.f32 %v2423_v34, %v612_v41 }
  0xaa   : > { %v700_v44 = vmin.f32 %v668_v40, 6.0  ;;  %v637_v46 = vadd.f32 %v2423_v34, %v636_v42 }
  0xab   : > { %725 = vst.msk [vmem:[#allocation2 + $0x19] sm:$0xff] %vm353_vm2, %v692_v43  ;;  %v676_v47 = vmax.f32 %v613_v45, 0.0 }
  0xac   : > { %v684_v48 = vmax.f32 %v637_v46, 0.0  ;;  %733 = vst.msk [vmem:[#allocation2 + $0x79] sm:$0xff] %vm353_vm2, %v700_v44  ;;  %v567_v49 = vpop.f32.mrf.mxu0 }
  0xad   : > { %v591_v50 = vpop.f32.mrf.mxu1  ;;  %v708_v51 = vmin.f32 %v676_v47, 6.0  ;;  %v568_v53 = vadd.f32 %v2423_v34, %v567_v49 }
  0xae   : > { %v716_v52 = vmin.f32 %v684_v48, 6.0  ;;  %v592_v54 = vadd.f32 %v2423_v34, %v591_v50 }
  0xaf   : > { %741 = vst.msk [vmem:[#allocation2 + $0xd9] sm:$0xff] %vm353_vm2, %v708_v51  ;;  %v661_v55 = vmax.f32 %v568_v53, 0.0 }
  0xb0   : > { %v669_v56 = vmax.f32 %v592_v54, 0.0  ;;  %749 = vst.msk [vmem:[#allocation2 + $0x139] sm:$0xff] %vm353_vm2, %v716_v52  ;;  %v615_v57 = vpop.f32.mrf.mxu2 }
  0xb1   : > { %v639_v58 = vpop.f32.mrf.mxu3  ;;  %v693_v59 = vmin.f32 %v661_v55, 6.0  ;;  %v616_v61 = vadd.f32 %v2423_v34, %v615_v57 }
  0xb2   : > { %v701_v60 = vmin.f32 %v669_v56, 6.0  ;;  %v640_v62 = vadd.f32 %v2423_v34, %v639_v58 }
  0xb3   : > { %726 = vst.msk [vmem:[#allocation2 + $0x21] sm:$0xff] %vm353_vm2, %v693_v59  ;;  %v677_v63 = vmax.f32 %v616_v61, 0.0 }
  0xb4   : > { %v685_v0 = vmax.f32 %v640_v62, 0.0  ;;  %734 = vst.msk [vmem:[#allocation2 + $0x81] sm:$0xff] %vm353_vm2, %v701_v60  ;;  %v570_v1 = vpop.f32.mrf.mxu0 }
  0xb5   : > { %v594_v2 = vpop.f32.mrf.mxu1  ;;  %v709_v3 = vmin.f32 %v677_v63, 6.0  ;;  %v571_v5 = vadd.f32 %v2423_v34, %v570_v1 }
  0xb6   : > { %v717_v4 = vmin.f32 %v685_v0, 6.0  ;;  %v595_v6 = vadd.f32 %v2423_v34, %v594_v2 }
  0xb7   : > { %742 = vst.msk [vmem:[#allocation2 + $0xe1] sm:$0xff] %vm353_vm2, %v709_v3  ;;  %v662_v7 = vmax.f32 %v571_v5, 0.0 }
  0xb8   : > { %v670_v8 = vmax.f32 %v595_v6, 0.0  ;;  %750 = vst.msk [vmem:[#allocation2 + $0x141] sm:$0xff] %vm353_vm2, %v717_v4  ;;  %v618_v9 = vpop.f32.mrf.mxu2 }
  0xb9   : > { %v642_v10 = vpop.f32.mrf.mxu3  ;;  %v694_v11 = vmin.f32 %v662_v7, 6.0  ;;  %v619_v13 = vadd.f32 %v2423_v34, %v618_v9 }
  0xba   : > { %v702_v12 = vmin.f32 %v670_v8, 6.0  ;;  %v643_v14 = vadd.f32 %v2423_v34, %v642_v10 }
  0xbb   : > { %727 = vst.msk [vmem:[#allocation2 + $0x31] sm:$0xff] %vm353_vm2, %v694_v11  ;;  %v678_v15 = vmax.f32 %v619_v13, 0.0 }
  0xbc   : > { %v686_v16 = vmax.f32 %v643_v14, 0.0  ;;  %735 = vst.msk [vmem:[#allocation2 + $0x91] sm:$0xff] %vm353_vm2, %v702_v12  ;;  %v573_v17 = vpop.f32.mrf.mxu0 }
  0xbd   : > { %v597_v18 = vpop.f32.mrf.mxu1  ;;  %v710_v19 = vmin.f32 %v678_v15, 6.0  ;;  %v574_v21 = vadd.f32 %v2423_v34, %v573_v17 }
  0xbe   : > { %v718_v20 = vmin.f32 %v686_v16, 6.0  ;;  %v598_v22 = vadd.f32 %v2423_v34, %v597_v18 }
  0xbf   : > { %743 = vst.msk [vmem:[#allocation2 + $0xf1] sm:$0xff] %vm353_vm2, %v710_v19  ;;  %v663_v23 = vmax.f32 %v574_v21, 0.0 }
  0xc0   : > { %v671_v24 = vmax.f32 %v598_v22, 0.0  ;;  %751 = vst.msk [vmem:[#allocation2 + $0x151] sm:$0xff] %vm353_vm2, %v718_v20  ;;  %v621_v25 = vpop.f32.mrf.mxu2 }
  0xc1   : > { %v645_v26 = vpop.f32.mrf.mxu3  ;;  %v695_v27 = vmin.f32 %v663_v23, 6.0  ;;  %v622_v29 = vadd.f32 %v2423_v34, %v621_v25 }
  0xc2   : > { %v703_v28 = vmin.f32 %v671_v24, 6.0  ;;  %v646_v30 = vadd.f32 %v2423_v34, %v645_v26 }
  0xc3   : > { %728 = vst.msk [vmem:[#allocation2 + $0x39] sm:$0xff] %vm353_vm2, %v695_v27  ;;  %v679_v31 = vmax.f32 %v622_v29, 0.0 }
  0xc4   : > { %v687_v32 = vmax.f32 %v646_v30, 0.0  ;;  %736 = vst.msk [vmem:[#allocation2 + $0x99] sm:$0xff] %vm353_vm2, %v703_v28  ;;  %v576_v33 = vpop.f32.mrf.mxu0 }
  0xc5   : > { %v600_v35 = vpop.f32.mrf.mxu1  ;;  %v711_v36 = vmin.f32 %v679_v31, 6.0  ;;  %v577_v38 = vadd.f32 %v2423_v34, %v576_v33 }
  0xc6   : > { %v719_v37 = vmin.f32 %v687_v32, 6.0  ;;  %v601_v39 = vadd.f32 %v2423_v34, %v600_v35 }
  0xc7   : > { %744 = vst.msk [vmem:[#allocation2 + $0xf9] sm:$0xff] %vm353_vm2, %v711_v36  ;;  %v664_v40 = vmax.f32 %v577_v38, 0.0 }
  0xc8   : > { %v672_v41 = vmax.f32 %v601_v39, 0.0  ;;  %752 = vst.msk [vmem:[#allocation2 + $0x159] sm:$0xff] %vm353_vm2, %v719_v37  ;;  %v624_v42 = vpop.f32.mrf.mxu2 }
  0xc9   : > { %v648_v43 = vpop.f32.mrf.mxu3  ;;  %v696_v44 = vmin.f32 %v664_v40, 6.0  ;;  %v625_v46 = vadd.f32 %v2423_v34, %v624_v42 }
  0xca   : > { %v704_v45 = vmin.f32 %v672_v41, 6.0  ;;  %v649_v47 = vadd.f32 %v2423_v34, %v648_v43 }
  0xcb   : > { %729 = vst.msk [vmem:[#allocation2 + $0x49] sm:$0xff] %vm353_vm2, %v696_v44  ;;  %v680_v48 = vmax.f32 %v625_v46, 0.0 }
  0xcc   : > { %v688_v49 = vmax.f32 %v649_v47, 0.0  ;;  %737 = vst.msk [vmem:[#allocation2 + $0xa9] sm:$0xff] %vm353_vm2, %v704_v45  ;;  %v579_v50 = vpop.f32.mrf.mxu0 }
  0xcd   : > { %v603_v51 = vpop.f32.mrf.mxu1  ;;  %v712_v52 = vmin.f32 %v680_v48, 6.0  ;;  %v580_v54 = vadd.f32 %v2423_v34, %v579_v50 }
  0xce   : > { %v720_v53 = vmin.f32 %v688_v49, 6.0  ;;  %v604_v55 = vadd.f32 %v2423_v34, %v603_v51 }
  0xcf   : > { %745 = vst.msk [vmem:[#allocation2 + $0x109] sm:$0xff] %vm353_vm2, %v712_v52  ;;  %v665_v56 = vmax.f32 %v580_v54, 0.0 }
  0xd0   : > { %v673_v57 = vmax.f32 %v604_v55, 0.0  ;;  %753 = vst.msk [vmem:[#allocation2 + $0x169] sm:$0xff] %vm353_vm2, %v720_v53  ;;  %v627_v58 = vpop.f32.mrf.mxu2 }
  0xd1   : > { %v651_v59 = vpop.f32.mrf.mxu3  ;;  %v697_v60 = vmin.f32 %v665_v56, 6.0  ;;  %v628_v62 = vadd.f32 %v2423_v34, %v627_v58 }
  0xd2   : > { %v705_v61 = vmin.f32 %v673_v57, 6.0  ;;  %v652_v63 = vadd.f32 %v2423_v34, %v651_v59 }
  0xd3   : > { %730 = vst.msk [vmem:[#allocation2 + $0x51] sm:$0xff] %vm353_vm2, %v697_v60  ;;  %v681_v0 = vmax.f32 %v628_v62, 0.0 }
  0xd4   : > { %v689_v1 = vmax.f32 %v652_v63, 0.0  ;;  %738 = vst.msk [vmem:[#allocation2 + $0xb1] sm:$0xff] %vm353_vm2, %v705_v61  ;;  %v582_v2 = vpop.f32.mrf.mxu0 }
  0xd5   : > { %v606_v3 = vpop.f32.mrf.mxu1  ;;  %v713_v4 = vmin.f32 %v681_v0, 6.0  ;;  %v583_v6 = vadd.f32 %v2423_v34, %v582_v2 }
  0xd6   : > { %v721_v5 = vmin.f32 %v689_v1, 6.0  ;;  %v607_v7 = vadd.f32 %v2423_v34, %v606_v3 }
  0xd7   : > { %746 = vst.msk [vmem:[#allocation2 + $0x111] sm:$0xff] %vm353_vm2, %v713_v4  ;;  %v666_v8 = vmax.f32 %v583_v6, 0.0 }
  0xd8   : > { %v674_v9 = vmax.f32 %v607_v7, 0.0  ;;  %754 = vst.msk [vmem:[#allocation2 + $0x171] sm:$0xff] %vm353_vm2, %v721_v5  ;;  %v630_v10 = vpop.f32.mrf.mxu2 }
  0xd9   : > { %v654_v11 = vpop.f32.mrf.mxu3  ;;  %v698_v12 = vmin.f32 %v666_v8, 6.0  ;;  %v631_v14 = vadd.f32 %v2423_v34, %v630_v10 }
  0xda   : > { %v706_v13 = vmin.f32 %v674_v9, 6.0  ;;  %v655_v15 = vadd.f32 %v2423_v34, %v654_v11 }
  0xdb   : > { %731 = vst.msk [vmem:[#allocation2 + $0x61] sm:$0xff] %vm353_vm2, %v698_v12  ;;  %v682_v16 = vmax.f32 %v631_v14, 0.0 }
  0xdc   : > { %v690_v17 = vmax.f32 %v655_v15, 0.0  ;;  %739 = vst.msk [vmem:[#allocation2 + $0xc1] sm:$0xff] %vm353_vm2, %v706_v13  ;;  %v585_v18 = vpop.f32.mrf.mxu0 }
  0xdd   : > { %v609_v19 = vpop.f32.mrf.mxu1  ;;  %v714_v20 = vmin.f32 %v682_v16, 6.0  ;;  %v586_v22 = vadd.f32 %v2423_v34, %v585_v18 }
  0xde   : > { %v722_v21 = vmin.f32 %v690_v17, 6.0  ;;  %v610_v23 = vadd.f32 %v2423_v34, %v609_v19 }
  0xdf   : > { %747 = vst.msk [vmem:[#allocation2 + $0x121] sm:$0xff] %vm353_vm2, %v714_v20  ;;  %v667_v24 = vmax.f32 %v586_v22, 0.0 }
  0xe0   : > { %v675_v25 = vmax.f32 %v610_v23, 0.0  ;;  %755 = vst.msk [vmem:[#allocation2 + $0x181] sm:$0xff] %vm353_vm2, %v722_v21  ;;  %v633_v26 = vpop.f32.mrf.mxu2 }
  0xe1   : > { %v657_v27 = vpop.f32.mrf.mxu3  ;;  %v699_v28 = vmin.f32 %v667_v24, 6.0  ;;  %v634_v30 = vadd.f32 %v2423_v34, %v633_v26 }
  0xe2   : > { %v707_v29 = vmin.f32 %v675_v25, 6.0  ;;  %v658_v31 = vadd.f32 %v2423_v34, %v657_v27 }
  0xe3   : > { %732 = vst.msk [vmem:[#allocation2 + $0x69] sm:$0xff] %vm353_vm2, %v699_v28  ;;  %v683_v32 = vmax.f32 %v634_v30, 0.0 }
  0xe4   : > { %v691_v33 = vmax.f32 %v658_v31, 0.0  ;;  %740 = vst.msk [vmem:[#allocation2 + $0xc9] sm:$0xff] %vm353_vm2, %v707_v29 }
  0xe5   : > { %v715_v35 = vmin.f32 %v683_v32, 6.0 }
  0xe6   : > { %v723_v36 = vmin.f32 %v691_v33, 6.0 }
  0xe7   : > { %748 = vst.msk [vmem:[#allocation2 + $0x129] sm:$0xff] %vm353_vm2, %v715_v35 }
  0xe8   : > { %756 = vst.msk [vmem:[#allocation2 + $0x189] sm:$0xff] %vm353_vm2, %v723_v36 }
  0xe9 PF: > { %s1908_s11 = smul.u32 192, %s2092_s30  ;;  %v790_v37 = vld [vmem:[%s3255_s3] sm:$0xff]  ;;  %vm874_vm4 = vcmask 1046528   ;;  %vm996_vm5 = vcmask 1045504   ;;  %v2547_v61 = vld [vmem:[%s3255_s3 + $0x8] ss:$0 sm:$0xff] }
  0xea   : > { %v2497_v34 = vperm.slane %v790_v37, 0  ;;  %v2499_v38 = vperm.slane %v790_v37, 1  ;;  %v2501_v39 = vperm.slane %v790_v37, 2  ;;  %v2503_v40 = vperm.slane %v790_v37, 4  ;;  %s1768_s21 = sshll.u32 %s335_s24, 4  ;;  %s2034_s15 = scalar_lea.hbm %s3260_s8, 16  ;;  %s1769_s21 = int_to_ptr.vmem [resolvable:$true] %s1768_s21 }
  0xeb   : > { %v2505_v41 = vperm.slane %v790_v37, 5  ;;  %s2507_s19 = scalar_lea.vmem [#allocation2], %s1908_s11  ;;  %v2518_v45 = vperm.slane %v790_v37, 3  ;;  %v2520_v46 = vperm.slane %v790_v37, 6  ;;  %v2531_v51 = vperm.slane %v790_v37, 7 }
  0xec   : > { %vm1678_vm6 = vcmask 64512  }
  0xef   : > { %v2510_v42 = vld [vmem:[%s2507_s19 + $0xb0] sm:$0xff]  ;;  %v2513_v43 = vld [vmem:[%s2507_s19 + $0xb8] sm:$0x3]  ;;  %v2516_v44 = vld [vmem:[%s2507_s19 + $0xc8] sm:$0xff] }
  0xf0   : > { %v2523_v47 = vld [vmem:[%s2507_s19 + $0xd0] sm:$0x3]  ;;  %v848_v48 = vmul.f32 %v2499_v38, %v2510_v42  ;;  %v849_v49 = vmul.f32 %v2499_v38, %v2513_v43  ;;  %v970_v50 = vmul.f32 %v2501_v39, %v2510_v42  ;;  %v788_v52 = vld [vmem:[%s2507_s19 + $0xe0] sm:$0xff]  ;;  %v808_v53 = vmul.f32 %v2497_v34, %v2510_v42  ;;  %v789_v62 = vld [vmem:[%s2507_s19 + $0xe8] sm:$0x3] }
  0xf1   : > { %v971_v54 = vmul.f32 %v2501_v39, %v2513_v43  ;;  %v1125_v55 = vmul.f32 %v2503_v40, %v2516_v44  ;;  %v1126_v56 = vmul.f32 %v2503_v40, %v2523_v47  ;;  %v1246_v60 = vmul.f32 %v2505_v41, %v2516_v44  ;;  %v2557_v7 = vld [vmem:[%s2507_s19 + $0xa8] sm:$0xff]  ;;  %v2567_v16 = vld [vmem:[%s2507_s19 + $0xc0] sm:$0xff]  ;;  %v787_v27 = vld [vmem:[%s2507_s19 + $0xd8] sm:$0xff] }
  0xf2   : > { %v911_v57 = vrot.slane %v848_v48, 1  ;;  %v913_v58 = vrot.slane %v849_v49, 1  ;;  %v1033_v59 = vrot.slane %v970_v50, 2  ;;  %v1247_v2 = vmul.f32 %v2505_v41, %v2523_v47  ;;  %v2589_v49 = vld [vmem:[%s2507_s19 + $0x98] sm:$0xff] }
  0xf3   : > { %v1035_v63 = vrot.slane %v971_v54, 2  ;;  %v1187_v0 = vrot.slane %v1125_v55, 1  ;;  %v1189_v1 = vrot.slane %v1126_v56, 1  ;;  %v1085_v4 = vmul.f32 %v2518_v45, %v2516_v44  ;;  %v2594_v55 = vld [vmem:[%s2507_s19 + $0xa0] sm:$0x3] }
  0xf4   : > { %v914_v3 = vsel %vm874_vm4, %v911_v57, %v913_v58  ;;  %v1308_v5 = vrot.slane %v1246_v60, 2  ;;  %v1400_v6 = vmul.f32 %v2531_v51, %v788_v52  ;;  %v1310_v10 = vrot.slane %v1247_v2, 2 }
  0xf5   : > { %v946_v8 = vadd.f32 %v914_v3, %v808_v53  ;;  %v1036_v9 = vsel %vm996_vm5, %v1033_v59, %v1035_v63  ;;  %v1360_v11 = vmul.f32 %v2520_v46, %v788_v52  ;;  %v1401_v12 = vmul.f32 %v2531_v51, %v789_v62 }
  0xf6   : > { %v1462_v13 = vrot.slane %v1400_v6, 1  ;;  %v2563_v14 = vmul.f32 %v2547_v61, %v788_v52  ;;  %v1522_v15 = vmul.f32 %v2547_v61, %v789_v62  ;;  %v1190_v18 = vsel %vm874_vm4, %v1187_v0, %v1189_v1 }
  0xf7   : > { %v1068_v17 = vadd.f32 %v1036_v9, %v946_v8  ;;  %v807_v19 = vmul.f32 %v2497_v34, %v2557_v7  ;;  %v847_v20 = vmul.f32 %v2499_v38, %v2557_v7  ;;  %v1464_v21 = vrot.slane %v1401_v12, 1 }
  0xf8   : > { %v1583_v22 = vrot.slane %v2563_v14, 2  ;;  %v1585_v23 = vrot.slane %v1522_v15, 2  ;;  %v969_v24 = vmul.f32 %v2501_v39, %v2557_v7  ;;  %v1311_v26 = vsel %vm996_vm5, %v1308_v5, %v1310_v10 }
  0xf9   : > { %v1101_v25 = vadd.f32 %v1085_v4, %v1068_v17  ;;  %v910_v28 = vrot.slane %v847_v20, 1  ;;  %v1124_v29 = vmul.f32 %v2503_v40, %v2567_v16  ;;  %v1465_v30 = vsel %vm874_vm4, %v1462_v13, %v1464_v21 }
  0xfa   : > { %v1032_v31 = vrot.slane %v969_v24, 2  ;;  %v1084_v32 = vmul.f32 %v2518_v45, %v2567_v16  ;;  %v1245_v33 = vmul.f32 %v2505_v41, %v2567_v16  ;;  %v1586_v36 = vsel %vm996_vm5, %v1583_v22, %v1585_v23 }
  0xfb   : > { %v1222_v35 = vadd.f32 %v1190_v18, %v1101_v25  ;;  %v912_v37 = vsel %vm874_vm4, %v910_v28, %v911_v57  ;;  %v1186_v48 = vrot.slane %v1124_v29, 1  ;;  %v1399_v54 = vmul.f32 %v2531_v51, %v787_v27 }
  0xfc   : > { %v945_v50 = vadd.f32 %v912_v37, %v807_v19  ;;  %v1034_v52 = vsel %vm996_vm5, %v1032_v31, %v1033_v59  ;;  %v1307_v53 = vrot.slane %v1245_v33, 2  ;;  %v1359_v60 = vmul.f32 %v2520_v46, %v787_v27 }
  0xfd   : > { %v1343_v56 = vadd.f32 %v1311_v26, %v1222_v35  ;;  %v1188_v58 = vsel %vm874_vm4, %v1186_v48, %v1187_v0  ;;  %v1520_v62 = vmul.f32 %v2547_v61, %v787_v27  ;;  %v1461_v57 = vrot.slane %v1399_v54, 1 }
  0xfe   : > { %v1067_v63 = vadd.f32 %v1034_v52, %v945_v50  ;;  %v806_v1 = vmul.f32 %v2497_v34, %v2589_v49  ;;  %v2603_v59 = vmul.f32 %v2499_v38, %v2589_v49  ;;  %v1309_v3 = vsel %vm996_vm5, %v1307_v53, %v1308_v5  ;;  %v2618_v5 = vld [vmem:[%s3256_s4] ss:$0 sm:$0xff] }
  0xff   : > { %v1376_v2 = vadd.f32 %v1360_v11, %v1343_v56  ;;  %v846_v4 = vmul.f32 %v2499_v38, %v2594_v55  ;;  %v2610_v0 = vmul.f32 %v2501_v39, %v2589_v49  ;;  %v1582_v8 = vrot.slane %v1520_v62, 2 }
 0x100   : > { %v1100_v6 = vadd.f32 %v1084_v32, %v1067_v63  ;;  %v906_v9 = vrot.slane %v2603_v59, 1  ;;  %v968_v10 = vmul.f32 %v2501_v39, %v2594_v55  ;;  %v1463_v11 = vsel %vm874_vm4, %v1461_v57, %v1462_v13 }
 0x101   : > { %v1497_v12 = vadd.f32 %v1465_v30, %v1376_v2  ;;  %v908_v14 = vrot.slane %v846_v4, 1  ;;  %v1028_v15 = vrot.slane %v2610_v0, 2  ;;  %v1083_v19 = vmul.f32 %v2518_v45, %v2510_v42 }
 0x102   : > { %v1221_v17 = vadd.f32 %v1188_v58, %v1100_v6  ;;  %v1030_v18 = vrot.slane %v968_v10, 2  ;;  %v2626_v20 = vmul.f32 %v2503_v40, %v2510_v42  ;;  %v1123_v24 = vmul.f32 %v2503_v40, %v2513_v43 }
 0x103   : > { %v1618_v21 = vadd.f32 %v1586_v36, %v1497_v12  ;;  %v909_v23 = vsel %vm874_vm4, %v906_v9, %v908_v14  ;;  %v1243_v13 = vmul.f32 %v2505_v41, %v2510_v42  ;;  %v1244_v31 = vmul.f32 %v2505_v41, %v2513_v43 }
 0x104   : > { %v1342_v25 = vadd.f32 %v1309_v3, %v1221_v17  ;;  %v944_v26 = vadd.f32 %v909_v23, %v806_v1  ;;  %v1031_v27 = vsel %vm996_vm5, %v1028_v15, %v1030_v18  ;;  %v1182_v28 = vrot.slane %v2626_v20, 1 }
 0x105   : > { %v1638_v29 = vadd.f32 %v2618_v5, %v1618_v21  ;;  %v1184_v30 = vrot.slane %v1123_v24, 1  ;;  %v1303_v32 = vrot.slane %v1243_v13, 2  ;;  %v1584_v35 = vsel %vm996_vm5, %v1582_v8, %v1583_v22 }
 0x106   : > { %v1375_v33 = vadd.f32 %v1359_v60, %v1342_v25  ;;  %v1066_v36 = vadd.f32 %v1031_v27, %v944_v26  ;;  %v1397_v37 = vmul.f32 %v2531_v51, %v2516_v44  ;;  %v1305_v52 = vrot.slane %v1244_v31, 2  ;;  %v2649_v60 = vld [vmem:[%s2507_s19 + $0x90] sm:$0xff] }
 0x107   : > { %v1654_v48 = vmax.f32 %v1638_v29, 0.0  ;;  %v1185_v50 = vsel %vm874_vm4, %v1182_v28, %v1184_v30  ;;  %v1398_v53 = vmul.f32 %v2531_v51, %v2523_v47  ;;  %v2646_v62 = vmul.f32 %v2547_v61, %v2516_v44  ;;  %v2678_v29 = vld [vmem:[%s2507_s19 + $0x80] sm:$0xff]  ;;  %v2681_v30 = vld [vmem:[%s2507_s19 + $0x88] sm:$0x3] }
 0x108   : > { %v1496_v54 = vadd.f32 %v1463_v11, %v1375_v33  ;;  %v1099_v56 = vadd.f32 %v1083_v19, %v1066_v36  ;;  %v1457_v58 = vrot.slane %v1397_v37, 1  ;;  %v1306_v63 = vsel %vm996_vm5, %v1303_v32, %v1305_v52 }
 0x109   : > { %v1670_v22 = vmin.f32 %v1654_v48, 6.0  ;;  %v1459_v57 = vrot.slane %v1398_v53, 1  ;;  %v1519_v1 = vmul.f32 %v2547_v61, %v2523_v47  ;;  %v1358_v3 = vmul.f32 %v2520_v46, %v2516_v44 }
 0x10a   : > { %v1617_v59 = vadd.f32 %v1584_v35, %v1496_v54  ;;  %v1220_v2 = vadd.f32 %v1185_v50, %v1099_v56  ;;  %v1578_v4 = vrot.slane %v2646_v62, 2  ;;  %v805_v6 = vmul.f32 %v2497_v34, %v2649_v60 }
 0x10b   : > { %1909 = vmatpush.xpose.msk.msra.mxu0 %vm1678_vm6, %v1670_v22  ;;  %v1580_v0 = vrot.slane %v1519_v1, 2  ;;  %v844_v8 = vmul.f32 %v2499_v38, %v2649_v60  ;;  %v966_v10 = vmul.f32 %v2501_v39, %v2649_v60  ;;  %v1460_v44 = vsel %vm874_vm4, %v1457_v58, %v1459_v57 }
 0x10c   : > { %v1637_v47 = vadd.f32 %v2618_v5, %v1617_v59  ;;  %v1341_v12 = vadd.f32 %v1306_v63, %v1220_v2  ;;  %v1121_v11 = vmul.f32 %v2503_v40, %v2557_v7  ;;  %v1082_v18 = vmul.f32 %v2518_v45, %v2557_v7 }
 0x10d   : > { %v905_v14 = vrot.slane %v844_v8, 1  ;;  %v1027_v17 = vrot.slane %v966_v10, 2  ;;  %v1242_v19 = vmul.f32 %v2505_v41, %v2557_v7  ;;  %v1581_v23 = vsel %vm996_vm5, %v1578_v4, %v1580_v0 }
 0x10e   : > { %v1653_v20 = vmax.f32 %v1637_v47, 0.0  ;;  %v1374_v21 = vadd.f32 %v1358_v3, %v1341_v12  ;;  %v1181_v24 = vrot.slane %v1121_v11, 1  ;;  %v1396_v27 = vmul.f32 %v2531_v51, %v2567_v16 }
 0x10f   : > { %v907_v13 = vsel %vm874_vm4, %v905_v14, %v906_v9  ;;  %v1029_v25 = vsel %vm996_vm5, %v1027_v17, %v1028_v15  ;;  %v1302_v26 = vrot.slane %v1242_v19, 2  ;;  %v1357_v36 = vmul.f32 %v2520_v46, %v2567_v16 }
 0x110   : > { %v1669_v31 = vmin.f32 %v1653_v20, 6.0  ;;  %v1495_v33 = vadd.f32 %v1460_v44, %v1374_v21  ;;  %v943_v35 = vadd.f32 %v907_v13, %v805_v6  ;;  %v1183_v37 = vsel %vm874_vm4, %v1181_v24, %v1182_v28 }
 0x111   : > { %v1304_v9 = vsel %vm996_vm5, %v1302_v26, %v1303_v32  ;;  %v1456_v48 = vrot.slane %v1396_v27, 1  ;;  %v1517_v15 = vmul.f32 %v2547_v61, %v2567_v16  ;;  %v2692_v53 = vmul.f32 %v2499_v38, %v2678_v29 }
 0x112   : > { %1910 = vmatpush.xpose.msk.msra.mxu0 %vm1678_vm6, %v1669_v31  ;;  %v1616_v50 = vadd.f32 %v1581_v23, %v1495_v33  ;;  %v1065_v52 = vadd.f32 %v1029_v25, %v943_v35  ;;  %v843_v54 = vmul.f32 %v2499_v38, %v2681_v30  ;;  %v804_v28 = vmul.f32 %v2497_v34, %v2678_v29  ;;  %v2734_v35 = vld [vmem:[%s2507_s19 + $0x78] sm:$0xff] }
 0x113   : > { %v1458_v56 = vsel %vm874_vm4, %v1456_v48, %v1457_v58  ;;  %v2701_v32 = vmul.f32 %v2501_v39, %v2678_v29  ;;  %v965_v16 = vmul.f32 %v2501_v39, %v2681_v30  ;;  %v901_v63 = vrot.slane %v2692_v53, 1 }
 0x114   : > { %v1636_v62 = vadd.f32 %v2618_v5, %v1616_v50  ;;  %v1098_v22 = vadd.f32 %v1082_v18, %v1065_v52  ;;  %v903_v57 = vrot.slane %v843_v54, 1  ;;  %v1577_v1 = vrot.slane %v1517_v15, 2 }
 0x115   : > { %v1023_v59 = vrot.slane %v2701_v32, 2  ;;  %v1025_v58 = vrot.slane %v965_v16, 2  ;;  %v1081_v2 = vmul.f32 %v2518_v45, %v2589_v49  ;;  %v1119_v8 = vmul.f32 %v2503_v40, %v2589_v49 }
 0x116   : > { %v1652_v3 = vmax.f32 %v1636_v62, 0.0  ;;  %v1219_v0 = vadd.f32 %v1183_v37, %v1098_v22  ;;  %v904_v6 = vsel %vm874_vm4, %v901_v63, %v903_v57  ;;  %v1120_v12 = vmul.f32 %v2503_v40, %v2594_v55 }
 0x117   : > { %v942_v10 = vadd.f32 %v904_v6, %v804_v28  ;;  %v1026_v47 = vsel %vm996_vm5, %v1023_v59, %v1025_v58  ;;  %v1240_v44 = vmul.f32 %v2505_v41, %v2589_v49  ;;  %v1177_v17 = vrot.slane %v1119_v8, 1 }
 0x118   : > { %v1668_v11 = vmin.f32 %v1652_v3, 6.0  ;;  %v1340_v14 = vadd.f32 %v1304_v9, %v1219_v0  ;;  %v1241_v18 = vmul.f32 %v2505_v41, %v2594_v55  ;;  %v1579_v19 = vsel %vm996_vm5, %v1577_v1, %v1578_v4 }
 0x119   : > { %v1064_v20 = vadd.f32 %v1026_v47, %v942_v10  ;;  %v1179_v21 = vrot.slane %v1120_v12, 1  ;;  %v1298_v23 = vrot.slane %v1240_v44, 2  ;;  %v1394_v25 = vmul.f32 %v2531_v51, %v2510_v42  ;;  %v2760_v44 = vld [vmem:[%s2507_s19 + $0x68] sm:$0xff] }
 0x11a   : > { %1911 = vmatpush.xpose.msk.msra.mxu0 %vm1678_vm6, %v1668_v11  ;;  %v1373_v24 = vadd.f32 %v1357_v36, %v1340_v14  ;;  %v1300_v13 = vrot.slane %v1241_v18, 2  ;;  %v1395_v26 = vmul.f32 %v2531_v51, %v2513_v43  ;;  %v2729_v33 = vmul.f32 %v2547_v61, %v2510_v42 }
 0x11b   : > { %v1097_v27 = vadd.f32 %v1081_v2, %v1064_v20  ;;  %v1180_v31 = vsel %vm874_vm4, %v1177_v17, %v1179_v21  ;;  %v1516_v4 = vmul.f32 %v2547_v61, %v2513_v43  ;;  %v1452_v9 = vrot.slane %v1394_v25, 1  ;;  %v2765_v20 = vld [vmem:[%s2507_s19 + $0x70] sm:$0x3] }
 0x11c   : > { %v1494_v36 = vadd.f32 %v1458_v56, %v1373_v24  ;;  %v1301_v37 = vsel %vm996_vm5, %v1298_v23, %v1300_v13  ;;  %v1454_v48 = vrot.slane %v1395_v26, 1  ;;  %v1356_v50 = vmul.f32 %v2520_v46, %v2510_v42 }
 0x11d   : > { %v1218_v15 = vadd.f32 %v1180_v31, %v1097_v27  ;;  %v1573_v52 = vrot.slane %v2729_v33, 2  ;;  %v1575_v53 = vrot.slane %v1516_v4, 2  ;;  %v803_v28 = vmul.f32 %v2497_v34, %v2734_v35 }
 0x11e   : > { %v1615_v54 = vadd.f32 %v1579_v19, %v1494_v36  ;;  %v841_v43 = vmul.f32 %v2499_v38, %v2734_v35  ;;  %v963_v56 = vmul.f32 %v2501_v39, %v2734_v35  ;;  %v1455_v16 = vsel %vm874_vm4, %v1452_v9, %v1454_v48 }
 0x11f   : > { %v1339_v32 = vadd.f32 %v1301_v37, %v1218_v15  ;;  %v1576_v62 = vsel %vm996_vm5, %v1573_v52, %v1575_v53  ;;  %v1118_v42 = vmul.f32 %v2503_v40, %v2649_v60  ;;  %v1239_v58 = vmul.f32 %v2505_v41, %v2649_v60 }
 0x120   : > { %v1635_v22 = vadd.f32 %v2618_v5, %v1615_v54  ;;  %v900_v57 = vrot.slane %v841_v43, 1  ;;  %v1022_v1 = vrot.slane %v963_v56, 2  ;;  %v1080_v3 = vmul.f32 %v2518_v45, %v2649_v60 }
 0x121   : > { %v1372_v2 = vadd.f32 %v1356_v50, %v1339_v32  ;;  %v1176_v0 = vrot.slane %v1118_v42, 1  ;;  %v1393_v6 = vmul.f32 %v2531_v51, %v2557_v7  ;;  %v1297_v12 = vrot.slane %v1239_v58, 2 }
 0x122   : > { %v1651_v8 = vmax.f32 %v1635_v22, 0.0  ;;  %v902_v10 = vsel %vm874_vm4, %v900_v57, %v901_v63  ;;  %v1024_v47 = vsel %vm996_vm5, %v1022_v1, %v1023_v59  ;;  %v1355_v18 = vmul.f32 %v2520_v46, %v2557_v7 }
 0x123   : > { %v1493_v11 = vadd.f32 %v1455_v16, %v1372_v2  ;;  %v941_v14 = vadd.f32 %v902_v10, %v803_v28  ;;  %v1451_v19 = vrot.slane %v1393_v6, 1  ;;  %v1178_v24 = vsel %vm874_vm4, %v1176_v0, %v1177_v17 }
 0x124   : > { %v1667_v21 = vmin.f32 %v1651_v8, 6.0  ;;  %v1299_v13 = vsel %vm996_vm5, %v1297_v12, %v1298_v23  ;;  %v1514_v63 = vmul.f32 %v2547_v61, %v2557_v7  ;;  %v802_v26 = vmul.f32 %v2497_v34, %v2760_v44  ;;  %v2809_v12 = vld [vmem:[%s2507_s19 + $0x60] sm:$0xff] }
 0x125   : > { %v1614_v59 = vadd.f32 %v1576_v62, %v1493_v11  ;;  %v1063_v25 = vadd.f32 %v1024_v47, %v941_v14  ;;  %v839_v27 = vmul.f32 %v2499_v38, %v2760_v44  ;;  %v1453_v31 = vsel %vm874_vm4, %v1451_v19, %v1452_v9 }
 0x126   : > { %1912 = vmatpush.xpose.msk.msra.mxu0 %vm1678_vm6, %v1667_v21  ;;  %v840_v17 = vmul.f32 %v2499_v38, %v2765_v20  ;;  %v2781_v23 = vmul.f32 %v2501_v39, %v2760_v44  ;;  %v962_v7 = vmul.f32 %v2501_v39, %v2765_v20  ;;  %v1572_v36 = vrot.slane %v1514_v63, 2 }
 0x127   : > { %v1634_v33 = vadd.f32 %v2618_v5, %v1614_v59  ;;  %v1096_v4 = vadd.f32 %v1080_v3, %v1063_v25  ;;  %v896_v37 = vrot.slane %v839_v27, 1  ;;  %v1079_v9 = vmul.f32 %v2518_v45, %v2678_v29 }
 0x128   : > { %v898_v48 = vrot.slane %v840_v17, 1  ;;  %v1018_v15 = vrot.slane %v2781_v23, 2  ;;  %v1020_v50 = vrot.slane %v962_v7, 2  ;;  %v2791_v28 = vmul.f32 %v2503_v40, %v2678_v29 }
 0x129   : > { %v1650_v53 = vmax.f32 %v1634_v33, 0.0  ;;  %v1217_v54 = vadd.f32 %v1178_v24, %v1096_v4  ;;  %v1117_v43 = vmul.f32 %v2503_v40, %v2681_v30  ;;  %v1237_v16 = vmul.f32 %v2505_v41, %v2678_v29 }
 0x12a   : > { %v899_v56 = vsel %vm874_vm4, %v896_v37, %v898_v48  ;;  %v1021_v32 = vsel %vm996_vm5, %v1018_v15, %v1020_v50  ;;  %v1238_v62 = vmul.f32 %v2505_v41, %v2681_v30  ;;  %v1172_v1 = vrot.slane %v2791_v28, 1 }
 0x12b   : > { %v1666_v42 = vmin.f32 %v1650_v53, 6.0  ;;  %v1338_v22 = vadd.f32 %v1299_v13, %v1217_v54  ;;  %v940_v57 = vadd.f32 %v899_v56, %v802_v26  ;;  %v1574_v58 = vsel %vm996_vm5, %v1572_v36, %v1573_v52 }
 0x12c   : > { %v1174_v2 = vrot.slane %v1117_v43, 1  ;;  %v1293_v3 = vrot.slane %v1237_v16, 2  ;;  %v1295_v0 = vrot.slane %v1238_v62, 2  ;;  %v1391_v10 = vmul.f32 %v2531_v51, %v2589_v49  ;;  %v2844_v62 = vld [vmem:[%s2507_s19 + $0x50] sm:$0xff] }
 0x12d   : > { %1913 = vmatpush.xpose.msk.msra.mxu0 %vm1678_vm6, %v1666_v42  ;;  %v1371_v6 = vadd.f32 %v1355_v18, %v1338_v22  ;;  %v1062_v8 = vadd.f32 %v1021_v32, %v940_v57  ;;  %v1392_v47 = vmul.f32 %v2531_v51, %v2594_v55  ;;  %v1354_v52 = vmul.f32 %v2520_v46, %v2589_v49 }
 0x12e   : > { %v1175_v11 = vsel %vm874_vm4, %v1172_v1, %v1174_v2  ;;  %v2816_v14 = vmul.f32 %v2547_v61, %v2589_v49  ;;  %v1513_v18 = vmul.f32 %v2547_v61, %v2594_v55  ;;  %v1447_v24 = vrot.slane %v1391_v10, 1 }
 0x12f   : > { %v1492_v19 = vadd.f32 %v1453_v31, %v1371_v6  ;;  %v1095_v21 = vadd.f32 %v1079_v9, %v1062_v8  ;;  %v1449_v13 = vrot.slane %v1392_v47, 1  ;;  %v1296_v63 = vsel %vm996_vm5, %v1293_v3, %v1295_v0 }
 0x130   : > { %v1568_v59 = vrot.slane %v2816_v14, 2  ;;  %v1570_v25 = vrot.slane %v1513_v18, 2  ;;  %v838_v26 = vmul.f32 %v2499_v38, %v2809_v12  ;;  %v801_v49 = vmul.f32 %v2497_v34, %v2809_v12 }
 0x131   : > { %v1613_v27 = vadd.f32 %v1574_v58, %v1492_v19  ;;  %v1216_v17 = vadd.f32 %v1175_v11, %v1095_v21  ;;  %v960_v55 = vmul.f32 %v2501_v39, %v2809_v12  ;;  %v1450_v31 = vsel %vm874_vm4, %v1447_v24, %v1449_v13  ;;  %v2851_v58 = vld [vmem:[%s2507_s19 + $0x58] sm:$0x3] }
 0x132   : > { %v1571_v23 = vsel %vm996_vm5, %v1568_v59, %v1570_v25  ;;  %v895_v7 = vrot.slane %v838_v26, 1  ;;  %v1115_v33 = vmul.f32 %v2503_v40, %v2734_v35  ;;  %v1236_v50 = vmul.f32 %v2505_v41, %v2734_v35 }
 0x133   : > { %v1633_v4 = vadd.f32 %v2618_v5, %v1613_v27  ;;  %v1337_v36 = vadd.f32 %v1296_v63, %v1216_v17  ;;  %v1017_v48 = vrot.slane %v960_v55, 2  ;;  %v1078_v53 = vmul.f32 %v2518_v45, %v2734_v35 }
 0x134   : > { %v897_v9 = vsel %vm874_vm4, %v895_v7, %v896_v37  ;;  %v1171_v54 = vrot.slane %v1115_v33, 1  ;;  %v1390_v28 = vmul.f32 %v2531_v51, %v2649_v60  ;;  %v1292_v42 = vrot.slane %v1236_v50, 2 }
 0x135   : > { %v1649_v43 = vmax.f32 %v1633_v4, 0.0  ;;  %v1370_v56 = vadd.f32 %v1354_v52, %v1337_v36  ;;  %v939_v32 = vadd.f32 %v897_v9, %v801_v49  ;;  %v1019_v16 = vsel %vm996_vm5, %v1017_v48, %v1018_v15 }
 0x136   : > { %v1353_v22 = vmul.f32 %v2520_v46, %v2649_v60  ;;  %v1446_v57 = vrot.slane %v1390_v28, 1  ;;  %v1511_v37 = vmul.f32 %v2547_v61, %v2649_v60  ;;  %v1173_v8 = vsel %vm874_vm4, %v1171_v54, %v1172_v1 }
 0x137   : > { %v1665_v2 = vmin.f32 %v1649_v43, 6.0  ;;  %v1491_v0 = vadd.f32 %v1450_v31, %v1370_v56  ;;  %v1061_v6 = vadd.f32 %v1019_v16, %v939_v32  ;;  %v1294_v10 = vsel %vm996_vm5, %v1292_v42, %v1293_v3  ;;  %v2896_v42 = vld [vmem:[%s2507_s19 + $0x48] sm:$0xff] }
 0x138   : > { %v1448_v15 = vsel %vm874_vm4, %v1446_v57, %v1447_v24  ;;  %v800_v47 = vmul.f32 %v2497_v34, %v2844_v62  ;;  %v2860_v11 = vmul.f32 %v2499_v38, %v2844_v62  ;;  %v837_v18 = vmul.f32 %v2499_v38, %v2851_v58 }
 0x139   : > { %1914 = vmatpush.xpose.msk.msra.mxu0 %vm1678_vm6, %v1665_v2  ;;  %v1612_v60 = vadd.f32 %v1571_v23, %v1491_v0  ;;  %v1094_v52 = vadd.f32 %v1078_v53, %v1061_v6  ;;  %v2867_v1 = vmul.f32 %v2501_v39, %v2844_v62  ;;  %v1567_v3 = vrot.slane %v1511_v37, 2 }
 0x13a   : > { %v891_v19 = vrot.slane %v2860_v11, 1  ;;  %v959_v21 = vmul.f32 %v2501_v39, %v2851_v58  ;;  %v1077_v24 = vmul.f32 %v2518_v45, %v2760_v44  ;;  %v893_v25 = vrot.slane %v837_v18, 1 }
 0x13b   : > { %v1632_v13 = vadd.f32 %v2618_v5, %v1612_v60  ;;  %v1215_v63 = vadd.f32 %v1173_v8, %v1094_v52  ;;  %v1013_v26 = vrot.slane %v2867_v1, 2  ;;  %v2878_v17 = vmul.f32 %v2503_v40, %v2760_v44 }
 0x13c   : > { %v1015_v27 = vrot.slane %v959_v21, 2  ;;  %v1114_v49 = vmul.f32 %v2503_v40, %v2765_v20  ;;  %v1234_v55 = vmul.f32 %v2505_v41, %v2760_v44  ;;  %v894_v7 = vsel %vm874_vm4, %v891_v19, %v893_v25 }
 0x13d   : > { %v1648_v31 = vmax.f32 %v1632_v13, 0.0  ;;  %v1336_v23 = vadd.f32 %v1294_v10, %v1215_v63  ;;  %v1235_v33 = vmul.f32 %v2505_v41, %v2765_v20  ;;  %v938_v4 = vadd.f32 %v894_v7, %v800_v47 }
 0x13e   : > { %v1016_v36 = vsel %vm996_vm5, %v1013_v26, %v1015_v27  ;;  %v1167_v48 = vrot.slane %v2878_v17, 1  ;;  %v1169_v50 = vrot.slane %v1114_v49, 1  ;;  %v1288_v54 = vrot.slane %v1234_v55, 2 }
 0x13f   : > { %v1664_v9 = vmin.f32 %v1648_v31, 6.0  ;;  %v1369_v53 = vadd.f32 %v1353_v22, %v1336_v23  ;;  %v1290_v28 = vrot.slane %v1235_v33, 2  ;;  %v1569_v43 = vsel %vm996_vm5, %v1567_v3, %v1568_v59  ;;  %v2931_v33 = vld [vmem:[%s2507_s19 + $0x38] sm:$0xff] }
 0x140   : > { %v1060_v56 = vadd.f32 %v1016_v36, %v938_v4  ;;  %v1170_v32 = vsel %vm874_vm4, %v1167_v48, %v1169_v50  ;;  %v1388_v16 = vmul.f32 %v2531_v51, %v2678_v29  ;;  %v1352_v22 = vmul.f32 %v2520_v46, %v2678_v29  ;;  %v2934_v4 = vld [vmem:[%s2507_s19 + $0x40] sm:$0x3] }
 0x141   : > { %1915 = vmatpush.xpose.msk.msra.mxu0 %vm1678_vm6, %v1664_v9  ;;  %v1490_v57 = vadd.f32 %v1448_v15, %v1369_v53  ;;  %v1389_v37 = vmul.f32 %v2531_v51, %v2681_v30  ;;  %v2905_v14 = vmul.f32 %v2547_v61, %v2678_v29  ;;  %v1291_v2 = vsel %vm996_vm5, %v1288_v54, %v1290_v28 }
 0x142   : > { %v1093_v59 = vadd.f32 %v1077_v24, %v1060_v56  ;;  %v1442_v0 = vrot.slane %v1388_v16, 1  ;;  %v1510_v6 = vmul.f32 %v2547_v61, %v2681_v30  ;;  %v835_v47 = vmul.f32 %v2499_v38, %v2896_v42 }
 0x143   : > { %v1611_v8 = vadd.f32 %v1569_v43, %v1490_v57  ;;  %v1444_v10 = vrot.slane %v1389_v37, 1  ;;  %v1563_v15 = vrot.slane %v2905_v14, 2  ;;  %v799_v29 = vmul.f32 %v2497_v34, %v2896_v42 }
 0x144   : > { %v1214_v11 = vadd.f32 %v1170_v32, %v1093_v59  ;;  %v1565_v60 = vrot.slane %v1510_v6, 2  ;;  %v957_v52 = vmul.f32 %v2501_v39, %v2896_v42  ;;  %v890_v1 = vrot.slane %v835_v47, 1 }
 0x145   : > { %v1631_v18 = vadd.f32 %v2618_v5, %v1611_v8  ;;  %v1076_v30 = vmul.f32 %v2518_v45, %v2809_v12  ;;  %v1112_v3 = vmul.f32 %v2503_v40, %v2809_v12  ;;  %v1445_v24 = vsel %vm874_vm4, %v1442_v0, %v1444_v10 }
 0x146   : > { %v1335_v21 = vadd.f32 %v1291_v2, %v1214_v11  ;;  %v1012_v13 = vrot.slane %v957_v52, 2  ;;  %v1233_v63 = vmul.f32 %v2505_v41, %v2809_v12  ;;  %v1566_v27 = vsel %vm996_vm5, %v1563_v15, %v1565_v60 }
 0x147   : > { %v1647_v25 = vmax.f32 %v1631_v18, 0.0  ;;  %v892_v17 = vsel %vm874_vm4, %v890_v1, %v891_v19  ;;  %v1166_v49 = vrot.slane %v1112_v3, 1  ;;  %v1351_v50 = vmul.f32 %v2520_v46, %v2734_v35 }
 0x148   : > { %v1368_v55 = vadd.f32 %v1352_v22, %v1335_v21  ;;  %v937_v31 = vadd.f32 %v892_v17, %v799_v29  ;;  %v1014_v23 = vsel %vm996_vm5, %v1012_v13, %v1013_v26  ;;  %v1287_v7 = vrot.slane %v1233_v63, 2 }
 0x149   : > { %v1663_v36 = vmin.f32 %v1647_v25, 6.0  ;;  %v1387_v9 = vmul.f32 %v2531_v51, %v2734_v35  ;;  %v1508_v19 = vmul.f32 %v2547_v61, %v2734_v35  ;;  %v1168_v43 = vsel %vm874_vm4, %v1166_v49, %v1167_v48 }
 0x14a   : > { %v1489_v53 = vadd.f32 %v1445_v24, %v1368_v55  ;;  %v1059_v28 = vadd.f32 %v1014_v23, %v937_v31  ;;  %v1289_v26 = vsel %vm996_vm5, %v1287_v7, %v1288_v54  ;;  %v798_v32 = vmul.f32 %v2497_v34, %v2931_v33 }
 0x14b   : > { %1916 = vmatpush.xpose.msk.msra.mxu0 %vm1678_vm6, %v1663_v36  ;;  %v1441_v56 = vrot.slane %v1387_v9, 1  ;;  %v2949_v16 = vmul.f32 %v2499_v38, %v2931_v33  ;;  %v834_v57 = vmul.f32 %v2499_v38, %v2934_v4  ;;  %v2955_v48 = vmul.f32 %v2501_v39, %v2931_v33 }
 0x14c   : > { %v1610_v35 = vadd.f32 %v1566_v27, %v1489_v53  ;;  %v1092_v22 = vadd.f32 %v1076_v30, %v1059_v28  ;;  %v956_v54 = vmul.f32 %v2501_v39, %v2934_v4  ;;  %v1562_v59 = vrot.slane %v1508_v19, 2 }
 0x14d   : > { %v1443_v37 = vsel %vm874_vm4, %v1441_v56, %v1442_v0  ;;  %v886_v2 = vrot.slane %v2949_v16, 1  ;;  %v888_v6 = vrot.slane %v834_v57, 1  ;;  %v1008_v47 = vrot.slane %v2955_v48, 2 }
 0x14e   : > { %v1630_v8 = vadd.f32 %v2618_v5, %v1610_v35  ;;  %v1213_v10 = vadd.f32 %v1168_v43, %v1092_v22  ;;  %v1010_v11 = vrot.slane %v956_v54, 2  ;;  %v1075_v29 = vmul.f32 %v2518_v45, %v2844_v62 }
 0x14f   : > { %v889_v60 = vsel %vm874_vm4, %v886_v2, %v888_v6  ;;  %v1110_v52 = vmul.f32 %v2503_v40, %v2844_v62  ;;  %v1111_v0 = vmul.f32 %v2503_v40, %v2851_v58  ;;  %v1231_v13 = vmul.f32 %v2505_v41, %v2844_v62 }
 0x150   : > { %v1646_v18 = vmax.f32 %v1630_v8, 0.0  ;;  %v1334_v1 = vadd.f32 %v1289_v26, %v1213_v10  ;;  %v936_v30 = vadd.f32 %v889_v60, %v798_v32  ;;  %v1011_v3 = vsel %vm996_vm5, %v1008_v47, %v1010_v11 }
 0x151   : > { %v1162_v21 = vrot.slane %v1110_v52, 1  ;;  %v1164_v24 = vrot.slane %v1111_v0, 1  ;;  %v1232_v63 = vmul.f32 %v2505_v41, %v2851_v58  ;;  %v1564_v17 = vsel %vm996_vm5, %v1562_v59, %v1563_v15  ;;  %v2989_v15 = vld [vmem:[%s2507_s19 + $0x30] sm:$0xff] }
 0x152   : > { %v1662_v25 = vmin.f32 %v1646_v18, 6.0  ;;  %v1367_v27 = vadd.f32 %v1351_v50, %v1334_v1  ;;  %v1058_v49 = vadd.f32 %v1011_v3, %v936_v30  ;;  %v1283_v31 = vrot.slane %v1231_v13, 2  ;;  %v3017_v3 = vld [vmem:[%s2507_s19 + $0x20] sm:$0xff] }
 0x153   : > { %v1165_v55 = vsel %vm874_vm4, %v1162_v21, %v1164_v24  ;;  %v1285_v23 = vrot.slane %v1232_v63, 2  ;;  %v1385_v7 = vmul.f32 %v2531_v51, %v2760_v44  ;;  %v1386_v19 = vmul.f32 %v2531_v51, %v2765_v20  ;;  %v3020_v24 = vld [vmem:[%s2507_s19 + $0x28] sm:$0x3] }
 0x154   : > { %1917 = vmatpush.xpose.msk.msra.mxu0 %vm1678_vm6, %v1662_v25  ;;  %v1488_v36 = vadd.f32 %v1443_v37, %v1367_v27  ;;  %v1091_v9 = vadd.f32 %v1075_v29, %v1058_v49  ;;  %v2986_v14 = vmul.f32 %v2547_v61, %v2760_v44  ;;  %v1350_v53 = vmul.f32 %v2520_v46, %v2760_v44 }
 0x155   : > { %v1286_v50 = vsel %vm996_vm5, %v1283_v31, %v1285_v23  ;;  %v1437_v28 = vrot.slane %v1385_v7, 1  ;;  %v1507_v43 = vmul.f32 %v2547_v61, %v2765_v20  ;;  %v1439_v32 = vrot.slane %v1386_v19, 1 }
 0x156   : > { %v1609_v26 = vadd.f32 %v1564_v17, %v1488_v36  ;;  %v1212_v56 = vadd.f32 %v1165_v55, %v1091_v9  ;;  %v1558_v16 = vrot.slane %v2986_v14, 2  ;;  %v797_v35 = vmul.f32 %v2497_v34, %v2989_v15 }
 0x157   : > { %v1560_v57 = vrot.slane %v1507_v43, 2  ;;  %v832_v22 = vmul.f32 %v2499_v38, %v2989_v15  ;;  %v954_v48 = vmul.f32 %v2501_v39, %v2989_v15  ;;  %v1074_v20 = vmul.f32 %v2518_v45, %v2896_v42 }
 0x158   : > { %v1629_v44 = vadd.f32 %v2618_v5, %v1609_v26  ;;  %v1333_v54 = vadd.f32 %v1286_v50, %v1212_v56  ;;  %v1109_v37 = vmul.f32 %v2503_v40, %v2896_v42  ;;  %v1440_v59 = vsel %vm874_vm4, %v1437_v28, %v1439_v32 }
 0x159   : > { %v885_v6 = vrot.slane %v832_v22, 1  ;;  %v1007_v8 = vrot.slane %v954_v48, 2  ;;  %v1230_v10 = vmul.f32 %v2505_v41, %v2896_v42  ;;  %v1561_v29 = vsel %vm996_vm5, %v1558_v16, %v1560_v57 }
 0x15a   : > { %v1645_v11 = vmax.f32 %v1629_v44, 0.0  ;;  %v1366_v60 = vadd.f32 %v1350_v53, %v1333_v54  ;;  %v1161_v52 = vrot.slane %v1109_v37, 1  ;;  %v1384_v30 = vmul.f32 %v2531_v51, %v2809_v12 }
 0x15b   : > { %v887_v0 = vsel %vm874_vm4, %v885_v6, %v886_v2  ;;  %v1009_v18 = vsel %vm996_vm5, %v1007_v8, %v1008_v47  ;;  %v1282_v1 = vrot.slane %v1230_v10, 2  ;;  %v1349_v27 = vmul.f32 %v2520_v46, %v2809_v12 }
 0x15c   : > { %v1661_v13 = vmin.f32 %v1645_v11, 6.0  ;;  %v1487_v63 = vadd.f32 %v1440_v59, %v1366_v60  ;;  %v935_v25 = vadd.f32 %v887_v0, %v797_v35  ;;  %v1163_v17 = vsel %vm874_vm4, %v1161_v52, %v1162_v21 }
 0x15d   : > { %v1284_v2 = vsel %vm996_vm5, %v1282_v1, %v1283_v31  ;;  %v1436_v49 = vrot.slane %v1384_v30, 1  ;;  %v1505_v47 = vmul.f32 %v2547_v61, %v2809_v12  ;;  %v3031_v7 = vmul.f32 %v2499_v38, %v3017_v3 }
 0x15e   : > { %1918 = vmatpush.xpose.msk.msra.mxu0 %vm1678_vm6, %v1661_v13  ;;  %v1608_v55 = vadd.f32 %v1561_v29, %v1487_v63  ;;  %v1057_v23 = vadd.f32 %v1009_v18, %v935_v25  ;;  %v831_v36 = vmul.f32 %v2499_v38, %v3020_v24  ;;  %v796_v21 = vmul.f32 %v2497_v34, %v3017_v3  ;;  %v3075_v25 = vld [vmem:[%s2507_s19 + $0x18] sm:$0xff] }
 0x15f   : > { %v1438_v9 = vsel %vm874_vm4, %v1436_v49, %v1437_v28  ;;  %v3040_v31 = vmul.f32 %v2501_v39, %v3017_v3  ;;  %v953_v12 = vmul.f32 %v2501_v39, %v3020_v24  ;;  %v881_v50 = vrot.slane %v3031_v7, 1 }
 0x160   : > { %v1628_v19 = vadd.f32 %v2618_v5, %v1608_v55  ;;  %v1090_v14 = vadd.f32 %v1074_v20, %v1057_v23  ;;  %v883_v53 = vrot.slane %v831_v36, 1  ;;  %v1557_v43 = vrot.slane %v1505_v47, 2 }
 0x161   : > { %v1003_v26 = vrot.slane %v3040_v31, 2  ;;  %v1005_v28 = vrot.slane %v953_v12, 2  ;;  %v1073_v56 = vmul.f32 %v2518_v45, %v2931_v33  ;;  %v1107_v22 = vmul.f32 %v2503_v40, %v2931_v33 }
 0x162   : > { %v1644_v32 = vmax.f32 %v1628_v19, 0.0  ;;  %v1211_v57 = vadd.f32 %v1163_v17, %v1090_v14  ;;  %v884_v35 = vsel %vm874_vm4, %v881_v50, %v883_v53  ;;  %v1108_v54 = vmul.f32 %v2503_v40, %v2934_v4 }
 0x163   : > { %v934_v48 = vadd.f32 %v884_v35, %v796_v21  ;;  %v1006_v44 = vsel %vm996_vm5, %v1003_v26, %v1005_v28  ;;  %v1228_v20 = vmul.f32 %v2505_v41, %v2931_v33  ;;  %v1157_v6 = vrot.slane %v1107_v22, 1 }
 0x164   : > { %v1660_v37 = vmin.f32 %v1644_v32, 6.0  ;;  %v1332_v59 = vadd.f32 %v1284_v2, %v1211_v57  ;;  %v1229_v8 = vmul.f32 %v2505_v41, %v2934_v4  ;;  %v1559_v10 = vsel %vm996_vm5, %v1557_v43, %v1558_v16 }
 0x165   : > { %v1056_v11 = vadd.f32 %v1006_v44, %v934_v48  ;;  %v1159_v60 = vrot.slane %v1108_v54, 1  ;;  %v1278_v29 = vrot.slane %v1228_v20, 2  ;;  %v3063_v18 = vmul.f32 %v2531_v51, %v2844_v62  ;;  %v761_v44 = vld [vmem:[%s2507_s19 + $0x8] sm:$0xff] }
 0x166   : > { %1919 = vmatpush.xpose.msk.msra.mxu0 %vm1678_vm6, %v1660_v37  ;;  %v1365_v52 = vadd.f32 %v1349_v27, %v1332_v59  ;;  %v1280_v0 = vrot.slane %v1229_v8, 2  ;;  %v1383_v1 = vmul.f32 %v2531_v51, %v2851_v58  ;;  %v3070_v16 = vmul.f32 %v2547_v61, %v2844_v62  ;;  %v762_v8 = vld [vmem:[%s2507_s19 + $0x10] sm:$0x3] }
 0x167   : > { %v1089_v30 = vadd.f32 %v1073_v56, %v1056_v11  ;;  %v1160_v13 = vsel %vm874_vm4, %v1157_v6, %v1159_v60  ;;  %v1504_v63 = vmul.f32 %v2547_v61, %v2851_v58  ;;  %v1432_v2 = vrot.slane %v3063_v18, 1 }
 0x168   : > { %v1486_v27 = vadd.f32 %v1438_v9, %v1365_v52  ;;  %v1281_v17 = vsel %vm996_vm5, %v1278_v29, %v1280_v0  ;;  %v1434_v49 = vrot.slane %v1383_v1, 1  ;;  %v1348_v55 = vmul.f32 %v2520_v46, %v2844_v62 }
 0x169   : > { %v1210_v47 = vadd.f32 %v1160_v13, %v1089_v30  ;;  %v1553_v23 = vrot.slane %v3070_v16, 2  ;;  %v1555_v7 = vrot.slane %v1504_v63, 2  ;;  %v829_v21 = vmul.f32 %v2499_v38, %v3075_v25 }
 0x16a   : > { %v1607_v36 = vadd.f32 %v1559_v10, %v1486_v27  ;;  %v951_v61 = vmul.f32 %v2501_v39, %v3075_v25  ;;  %v1435_v9 = vsel %vm874_vm4, %v1432_v2, %v1434_v49  ;;  %v795_v31 = vmul.f32 %v2497_v34, %v3075_v25 }
 0x16b   : > { %v1331_v58 = vadd.f32 %v1281_v17, %v1210_v47  ;;  %v1106_v62 = vmul.f32 %v2503_v40, %v2989_v15  ;;  %v880_v19 = vrot.slane %v829_v21, 1  ;;  %v1227_v53 = vmul.f32 %v2505_v41, %v2989_v15 }
 0x16c   : > { %v1627_v12 = vadd.f32 %v2618_v5, %v1607_v36  ;;  %v1002_v14 = vrot.slane %v951_v61, 2  ;;  %v1556_v28 = vsel %vm996_vm5, %v1553_v23, %v1555_v7  ;;  %v1381_v32 = vmul.f32 %v2531_v51, %v2896_v42 }
 0x16d   : > { %v1364_v43 = vadd.f32 %v1348_v55, %v1331_v58  ;;  %v1156_v56 = vrot.slane %v1106_v62, 1  ;;  %v882_v35 = vsel %vm874_vm4, %v880_v19, %v881_v50  ;;  %v1277_v48 = vrot.slane %v1227_v53, 2  ;;  %v3113_v50 = vld [vmem:[%s3255_s3 + $0x8] ss:$0 sm:$0xff] }
 0x16e   : > { %v1643_v57 = vmax.f32 %v1627_v12, 0.0  ;;  %v1004_v22 = vsel %vm996_vm5, %v1002_v14, %v1003_v26  ;;  %v933_v20 = vadd.f32 %v882_v35, %v795_v31  ;;  %v1072_v37 = vmul.f32 %v2518_v45, %v2989_v15 }
 0x16f   : > { %v1485_v54 = vadd.f32 %v1435_v9, %v1364_v43  ;;  %v1347_v59 = vmul.f32 %v2520_v46, %v2896_v42  ;;  %v1158_v11 = vsel %vm874_vm4, %v1156_v56, %v1157_v6  ;;  %v1431_v60 = vrot.slane %v1381_v32, 1 }
 0x170   : > { %v1659_v10 = vmin.f32 %v1643_v57, 6.0  ;;  %v1502_v26 = vmul.f32 %v3113_v50, %v2896_v42  ;;  %v1055_v0 = vadd.f32 %v1004_v22, %v933_v20  ;;  %v1279_v1 = vsel %vm996_vm5, %v1277_v48, %v1278_v29  ;;  %v760_v48 = vld [vmem:[%s2507_s19] sm:$0xff]  ;;  %s1927_s19 = sshll.u32 %s2096_s9, 1  ;;  %s3277_s9 = sand.u32 1, %s2084_s28  }
 0x171   : > { %v1606_v52 = vadd.f32 %v1556_v28, %v1485_v54  ;;  %v3119_v30 = vmul.f32 %v2499_v38, %v761_v44  ;;  %v794_v6 = vmul.f32 %v2497_v34, %v761_v44  ;;  %v828_v13 = vmul.f32 %v2499_v38, %v762_v8  ;;  %s1764_s26 = sadd.s32 %s2092_s30, %s1927_s19  ;;  %s1754_s30 = scalar_lea.sflag [#allocation4], %s3277_s9 }
 0x172   : > { %1920 = vmatpush.xpose.msk.msra.mxu0 %vm1678_vm6, %v1659_v10  ;;  %v3125_v63 = vmul.f32 %v2501_v39, %v761_v44  ;;  %v950_v27 = vmul.f32 %v2501_v39, %v762_v8  ;;  %v1088_v17 = vadd.f32 %v1072_v37, %v1055_v0  ;;  %v1552_v49 = vrot.slane %v1502_v26, 2  ;;  %s1928_s13 = sshll.u32 %s1764_s26, 2 }
 0x173   : > { %v1626_v42 = vadd.f32 %v2618_v5, %v1606_v52  ;;  %v876_v29 = vrot.slane %v3119_v30, 1  ;;  %v878_v47 = vrot.slane %v828_v13, 1  ;;  %v1071_v36 = vmul.f32 %v2518_v45, %v3017_v3  ;;  %s1766_s20 = scalar_lea.hbm %s3260_s8, %s1928_s13 }
 0x174   : > { %v998_v55 = vrot.slane %v3125_v63, 2  ;;  %v1000_v7 = vrot.slane %v950_v27, 2  ;;  %v1209_v61 = vadd.f32 %v1158_v11, %v1088_v17  ;;  %v1104_v58 = vmul.f32 %v2503_v40, %v3017_v3  ;;  %s1770_s22 = sshll.u32 %s1766_s20, 4  ;;  %s1771_s22 = int_to_ptr.hbm [resolvable:$true] %s1770_s22 }
 0x175   : > { %v1642_v21 = vmax.f32 %v1626_v42, 0.0  ;;  %v1105_v9 = vmul.f32 %v2503_v40, %v3020_v24  ;;  %v879_v5 = vsel %vm874_vm4, %v876_v29, %v878_v47  ;;  %v3141_v62 = vmul.f32 %v2505_v41, %v3017_v3  ;;  %s2028_s29 = sshra.s32 %s1771_s22, 4  ;;  %s2029_s29 = int_to_ptr.hbm [resolvable:$true] %s2028_s29 }
 0x176   : > { %v1001_v31 = vsel %vm996_vm5, %v998_v55, %v1000_v7  ;;  %v1226_v12 = vmul.f32 %v2505_v41, %v3020_v24  ;;  %v1330_v14 = vadd.f32 %v1279_v1, %v1209_v61  ;;  %v932_v53 = vadd.f32 %v879_v5, %v794_v6  ;;  %s2030_s10 = scalar_lea.hbm %s2029_s29, 4  ;;  %p2035_p5 = scmp.lt.s32.totalorder %s2029_s29, %s3260_s8 }
 0x177   : > { %v1658_v19 = vmin.f32 %v1642_v21, 6.0  ;;  %v1152_v43 = vrot.slane %v1104_v58, 1  ;;  %v1433_v28 = vsel %vm874_vm4, %v1431_v60, %v1432_v2  ;;  %v1154_v56 = vrot.slane %v1105_v9, 1  ;;  %p2031_p1 = scmp.ne.s32.totalorder %s2029_s29, %s2030_s10  ;;  %p2036_p6 = scmp.lt.s32.totalorder %s2034_s15, %s2030_s10 }
 0x178   : > { %v1273_v32 = vrot.slane %v3141_v62, 2  ;;  %v1275_v57 = vrot.slane %v1226_v12, 2  ;;  %v1363_v35 = vadd.f32 %v1347_v59, %v1330_v14  ;;  %v1054_v3 = vadd.f32 %v1001_v31, %v932_v53 }
 0x179   : > { %1921 = vmatpush.xpose.msk.msra.mxu0 %vm1678_vm6, %v1658_v19  ;;  %v1379_v22 = vmul.f32 %v2531_v51, %v2931_v33  ;;  %v1380_v24 = vmul.f32 %v2531_v51, %v2934_v4  ;;  %v1554_v18 = vsel %vm996_vm5, %v1552_v49, %v1553_v23  ;;  %v1155_v2 = vsel %vm874_vm4, %v1152_v43, %v1154_v56  ;;  %p2032_p2 = pnand %p2031_p1, %p2208_p3  ;;  %p2037_p7 = por %p2036_p6, %p2035_p5 }
 0x17a   : > { %v1500_v44 = vmul.f32 %v3113_v50, %v2931_v33  ;;  %v1501_v54 = vmul.f32 %v3113_v50, %v2934_v4  ;;  %v1484_v20 = vadd.f32 %v1433_v28, %v1363_v35  ;;  %v1087_v37 = vadd.f32 %v1071_v36, %v1054_v3 }
 0x17b   : > { %v1346_v59 = vmul.f32 %v2520_v46, %v2931_v33  ;;  %v1276_v8 = vsel %vm996_vm5, %v1273_v32, %v1275_v57  ;;  %v1427_v10 = vrot.slane %v1379_v22, 1  ;;  %v1429_v11 = vrot.slane %v1380_v24, 1  ;;  %v2013_v33 = vld [vmem:[%s3256_s4] ss:$0 sm:$0xff]  ;;  %p2033_p4 = pneg %p2032_p2 }
 0x17c   : > { %v826_v16 = vmul.f32 %v2499_v38, %v760_v48  ;;  %v1605_v23 = vadd.f32 %v1554_v18, %v1484_v20  ;;  %v1208_v60 = vadd.f32 %v1155_v2, %v1087_v37  ;;  %v793_v26 = vmul.f32 %v2497_v34, %v760_v48  ;;  %v1750_v18 = vld [vmem:[%s2245_s23] sm:$0xf] }
 0x17d   : > { %v948_v52 = vmul.f32 %v2501_v39, %v760_v48  ;;  %v1548_v0 = vrot.slane %v1500_v44, 2  ;;  %v1550_v1 = vrot.slane %v1501_v54, 2  ;;  %v1103_v30 = vmul.f32 %v2503_v40, %v3075_v25  ;;  %p2038_p9 = pnand %p2037_p7, %p2033_p4 }
 0x17e   : > { %v875_v4 = vrot.slane %v826_v16, 1  ;;  %v1625_v6 = vadd.f32 %v2013_v33, %v1605_v23  ;;  %v1329_v13 = vadd.f32 %v1276_v8, %v1208_v60  ;;  %v1224_v38 = vmul.f32 %v2505_v41, %v3075_v25  ;;  %v1672_v41 = vld [vmem:[%s3258_s6] sm:$0xf] }
 0x17f   : > { %v997_v63 = vrot.slane %v948_v52, 2  ;;  %v1430_v34 = vsel %vm874_vm4, %v1427_v10, %v1429_v11  ;;  %v1070_v27 = vmul.f32 %v2518_v45, %v3075_v25  ;;  %v1151_v42 = vrot.slane %v1103_v30, 1 }
 0x180   : > { %v877_v39 = vsel %vm874_vm4, %v875_v4, %v876_v29  ;;  %v1641_v17 = vmax.f32 %v1625_v6, 0.0  ;;  %v1362_v40 = vadd.f32 %v1346_v59, %v1329_v13  ;;  %v1551_v7 = vsel %vm996_vm5, %v1548_v0, %v1550_v1 }
 0x181   : > { %v931_v49 = vadd.f32 %v877_v39, %v793_v26  ;;  %v999_v47 = vsel %vm996_vm5, %v997_v63, %v998_v55  ;;  %v1272_v36 = vrot.slane %v1224_v38, 2  ;;  %v1378_v21 = vmul.f32 %v2531_v51, %v2989_v15 }
 0x182   : > { %v1657_v29 = vmin.f32 %v1641_v17, 6.0  ;;  %v1483_v61 = vadd.f32 %v1430_v34, %v1362_v40  ;;  %v1153_v45 = vsel %vm874_vm4, %v1151_v42, %v1152_v43  ;;  %v1499_v25 = vmul.f32 %v3113_v50, %v2989_v15 }
 0x183   : > { %v1053_v58 = vadd.f32 %v999_v47, %v931_v49  ;;  %v2111_v9 = vmov 0   ;;  %v1274_v51 = vsel %vm996_vm5, %v1272_v36, %v1273_v32  ;;  %v1426_v31 = vrot.slane %v1378_v21, 1 }
 0x184   : > { %2009 = vset.pattern.permute.xlu0 %v2111_v9  ;;  %1922 = vmatpush.xpose.msk.msra.mxu0 %vm1678_vm6, %v1657_v29  ;;  %v1604_v55 = vadd.f32 %v1551_v7, %v1483_v61  ;;  %v1345_v19 = vmul.f32 %v2520_v46, %v2989_v15  ;;  %v1547_v14 = vrot.slane %v1499_v25, 2  ;;  %v1671_v15 = vld [vmem:[%s3257_s5] sm:$0xf] }
 0x185   : > { %v1086_v5 = vadd.f32 %v1070_v27, %v1053_v58  ;;  %1675 = vperm.xlu0 %2009, %v1672_v41   ;;  %v1428_v43 = vsel %vm874_vm4, %v1426_v31, %v1427_v10 }
 0x186   : > { %v1624_v62 = vadd.f32 %v2013_v33, %v1604_v55  ;;  %v1549_v57 = vsel %vm996_vm5, %v1547_v14, %v1548_v0 }
 0x187   : > { %v1207_v12 = vadd.f32 %v1153_v45, %v1086_v5 }
 0x188   : > { %v1640_v53 = vmax.f32 %v1624_v62, 0.0 }
 0x189   : > { %v1328_v50 = vadd.f32 %v1274_v51, %v1207_v12 }
 0x18a   : > { %v1656_v28 = vmin.f32 %v1640_v53, 6.0 }
 0x18b   : > { %v1361_v56 = vadd.f32 %v1345_v19, %v1328_v50 }
 0x18c   : > { %1923 = vmatpush.xpose.msk.msra.mxu0 %vm1678_vm6, %v1656_v28 }
 0x18d   : > { %v1482_v32 = vadd.f32 %v1428_v43, %v1361_v56 }
 0x18f   : > { %v1603_v35 = vadd.f32 %v1549_v57, %v1482_v32 }
 0x191   : > { %v1623_v3 = vadd.f32 %v2013_v33, %v1603_v35 }
 0x193   : > { %v1639_v22 = vmax.f32 %v1623_v3, 0.0 }
 0x195   : > { %v1655_v46 = vmin.f32 %v1639_v22, 6.0 }
 0x197   : > { %1924 = vmatpush.xpose.msk.msra.mxu0 %vm1678_vm6, %v1655_v46 }
 0x19a   : > { %1925 = vmatmul.msk.f32.vlgmr.msra.gmra.mxu0 %vm1678_vm6, %v1671_v15 }
 0x1f7   : > { %v1676_v24 = vpop.permute.xlu0 %1675 }
 0x217   : > { %v1747_v48 = vpop.f32.mrf.mxu0 }
 0x218   : > { %v1748_v2 = vadd.f32 %v1747_v48, %v1676_v24 }
 0x21a   : > { %v1751_v44 = vadd.f32 %v1750_v18, %v1748_v2 }
 0x21c   : > { %1752 = vst [vmem:[%s335_s24] sm:$0xf] %v1751_v44 }
 0x21d   : > { %2041 = shalt.err (!%p2038_p9)
}
 0x21e   : > { %1935 = dma.vmem_to_hbm [thread:$0]  (%p2208_p3), %s1769_s21, 64, %s1771_s22, %s1754_s30  }
 0x21f PF: > { %p1941_p10 = scmp.ge.s32.totalorder %s2108_s12, 2  ;;  %s1782_s25 = sand.u32 1, %s2080_s27  }
 0x220   : > { %s1783_s26 = scalar_lea.sflag [#allocation4], %s1782_s25 }
 0x221   : > { %p1938_p11 = pnand %p1941_p10, %p2217_p8 }
 0x223   : > { %p1939_p12 = pneg %p1938_p11 }
 0x225   : > { %2075 = dma.done.wait (%p1939_p12), %s1783_s26, 64  }
 0x226   : > { %2077 = vsyncadd (%p1939_p12), %s1783_s26, 4294967232  ;;  %s21_s12 = sadd.s32 1, %s2108_s12   ;;  %s3279_s13 = sld [smem:[#allocation6_spill]] }
 0x227   : > { %p18_p13 = scmp.ge.s32.totalorder %s21_s12, 6   ;;  %s3280_s29 = sld [smem:[#allocation12_spill]] }
 0x228   : > { %s3281_s30 = sld [smem:[#allocation7_spill]]  ;;  %s3285_s27 = smov %s2084_s28 }
 0x229   : > { %s3282_s9 = sld [smem:[#allocation8_spill]]  ;;  %20 = sbr.rel (!%p18_p13) target bundleno = 5 (0x5), region = 96 }
 0x22a   : > { %s3283_s10 = sld [smem:[#allocation9_spill]] }
 0x22b   : > { %s3284_s11 = sld [smem:[#allocation10_spill]] }
 0x22c   : > { %s3286_s28 = smov %s3279_s13 }
 0x22e   :  { %1789 = vsyncpa [#allocation4], 1 }
 0x22f   :  { %1791 = vsyncpa [#allocation4 + $0x1], 1 }

</bundles_post_ra>
